<compile_context>
chip_gen: v7x
topology: tpu7x:2x2x1
jax: 0.10.0
libtpu: 0.0.40
codegen_flags: <defaults>
</compile_context>

<pallas_src>
import functools

import jax
import jax.numpy as jnp
from jax.experimental import pallas as pl
from jax.experimental.pallas import tpu as pltpu

BN_EPS = 1e-5


def _round_up(x, m):
    return (x + m - 1) // m * m


# --------------------------------------------------------------------------------------------
# Pass A: conv1 (3x3, stride 2, pad 1) + shortcut (1x1, stride 2) + per-image BN partial stats
# --------------------------------------------------------------------------------------------
def _conv1_shortcut_kernel(x00_ref, x01_ref, x10_ref, x11_ref, w1_ref, ws_ref,
                           y1_ref, ysc_ref, st_ref, *, ho, wo, cin, cpad):
    # phase arrays of the spatially padded input: xs[p][q][i, j, c] = x_pad[2i+p, 2j+q, c]
    xs = ((x00_ref[0], x01_ref[0]), (x10_ref[0], x11_ref[0]))

    def tap(kh, kw):
        # stride-2 / pad-1 tap (kh, kw) as a contiguous slice of one phase array, (ho*wo, cin)
        v = xs[kh % 2][kw % 2]
        return v[kh // 2:kh // 2 + ho, kw // 2:kw // 2 + wo, :].reshape(ho * wo, cin)

    acc = jnp.zeros((ho * wo, cpad), jnp.float32)
    for kh in range(3):
        for kw in range(3):
            acc = acc + jnp.dot(tap(kh, kw), w1_ref[kh * 3 + kw],
                                preferred_element_type=jnp.float32)
    # 1x1 stride-2 shortcut == centre tap of the 3x3/s2 patches; reuse it with its own small K.
    acc_s = jnp.dot(tap(1, 1), ws_ref[...], preferred_element_type=jnp.float32)

    y1_ref[...] = acc.astype(y1_ref.dtype)
    ysc_ref[...] = acc_s.astype(ysc_ref.dtype)

    # per-image partial stats (row 0 = sum, row 1 = sum of squares), f32
    s = jnp.concatenate([jnp.sum(acc, axis=0, keepdims=True),
                         jnp.sum(acc_s, axis=0, keepdims=True)], axis=1)
    q = jnp.concatenate([jnp.sum(acc * acc, axis=0, keepdims=True),
                         jnp.sum(acc_s * acc_s, axis=0, keepdims=True)], axis=1)
    st_ref[0] = jnp.concatenate([s, q], axis=0)


def conv1_shortcut_pallas(xp, w1, ws, *, ho, wo, cpad):
    n, hp2, wp2, cin = xp[0].shape
    m_img = ho * wo
    kernel = functools.partial(_conv1_shortcut_kernel, ho=ho, wo=wo, cin=cin, cpad=cpad)
    cost = pl.CostEstimate(
        flops=2 * n * m_img * cin * cpad * 10,
        transcendentals=0,
        bytes_accessed=4 * xp[0].size * 2 + w1.size * 2 + ws.size * 2
        + 2 * n * m_img * cpad * 2 + n * 2 * 2 * cpad * 4,
    )
    return pl.pallas_call(
        kernel,
        out_shape=(
            jax.ShapeDtypeStruct((n * m_img, cpad), jnp.bfloat16),   # conv1 raw output
            jax.ShapeDtypeStruct((n * m_img, cpad), jnp.bfloat16),   # shortcut raw output
            jax.ShapeDtypeStruct((n, 2, 2 * cpad), jnp.float32),     # per-image partial stats
        ),
        grid_spec=pltpu.PrefetchScalarGridSpec(
            num_scalar_prefetch=0,
            grid=(n,),
            in_specs=[pl.BlockSpec((1, hp2, wp2, cin), lambda i: (i, 0, 0, 0))] * 4
            + [
                pl.BlockSpec((9, cin, cpad), lambda i: (0, 0, 0)),   # conv1 weights (resident)
                pl.BlockSpec((cin, cpad), lambda i: (0, 0)),         # shortcut weights (resident)
            ],
            out_specs=(
                pl.BlockSpec((m_img, cpad), lambda i: (i, 0)),
                pl.BlockSpec((m_img, cpad), lambda i: (i, 0)),
                pl.BlockSpec((1, 2, 2 * cpad), lambda i: (i, 0, 0)),
            ),
        ),
        compiler_params=pltpu.CompilerParams(dimension_semantics=("parallel",)),
        cost_estimate=cost,
    )(xp[0], xp[1], xp[2], xp[3], w1, ws)


# --------------------------------------------------------------------------------------------
# Pass B: BN1 + ReLU, written directly as a zero-bordered padded image (conv2's input)
# --------------------------------------------------------------------------------------------
def _bn_relu_pad_kernel(y_ref, scale_ref, shift_ref, o_ref, *, ho, wo):
    y = y_ref[...].astype(jnp.float32)
    out = jnp.maximum(y * scale_ref[...] + shift_ref[...], 0.0)
    o_ref[...] = jnp.zeros(o_ref.shape, o_ref.dtype)                      # zero border
    o_ref[0, 1:ho + 1, 1:wo + 1, :] = out.reshape(ho, wo, out.shape[-1]).astype(o_ref.dtype)


def bn_relu_pad_pallas(y, scale, shift, *, n, ho, wo, cpad):
    m_img = ho * wo
    kernel = functools.partial(_bn_relu_pad_kernel, ho=ho, wo=wo)
    return pl.pallas_call(
        kernel,
        out_shape=jax.ShapeDtypeStruct((n, ho + 2, wo + 2, cpad), jnp.bfloat16),
        grid_spec=pltpu.PrefetchScalarGridSpec(
            num_scalar_prefetch=0,
            grid=(n,),
            in_specs=[
                pl.BlockSpec((m_img, cpad), lambda i: (i, 0)),
                pl.BlockSpec((1, cpad), lambda i: (0, 0)),
                pl.BlockSpec((1, cpad), lambda i: (0, 0)),
            ],
            out_specs=pl.BlockSpec((1, ho + 2, wo + 2, cpad), lambda i: (i, 0, 0, 0)),
        ),
        compiler_params=pltpu.CompilerParams(dimension_semantics=("parallel",)),
    )(y, scale, shift)


# --------------------------------------------------------------------------------------------
# Pass C: conv2 (3x3, stride 1, pad 1) + per-image BN partial stats
# --------------------------------------------------------------------------------------------
def _conv2_kernel(x_ref, w2_ref, y_ref, st_ref, *, ho, wo, cpad):
    x = x_ref[0]                                     # (ho+2, wo+2, cpad), zero border baked in
    acc = jnp.zeros((ho * wo, cpad), jnp.float32)
    for kh in range(3):
        # 3 kw taps concatenated along lanes (128-aligned) -> one K = 3*cpad MXU matmul per kh
        g = jnp.concatenate(
            [x[kh:kh + ho, 0:wo, :], x[kh:kh + ho, 1:1 + wo, :], x[kh:kh + ho, 2:2 + wo, :]],
            axis=-1,
        ).reshape(ho * wo, 3 * cpad)
        acc = acc + jnp.dot(g, w2_ref[kh], preferred_element_type=jnp.float32)
    y_ref[...] = acc.astype(y_ref.dtype)
    st_ref[0] = jnp.concatenate(
        [jnp.sum(acc, axis=0, keepdims=True), jnp.sum(acc * acc, axis=0, keepdims=True)],
        axis=0,
    )


def conv2_pallas(y1p, w2, *, ho, wo, cpad):
    n = y1p.shape[0]
    m_img = ho * wo
    kernel = functools.partial(_conv2_kernel, ho=ho, wo=wo, cpad=cpad)
    cost = pl.CostEstimate(
        flops=2 * n * m_img * 9 * cpad * cpad,
        transcendentals=0,
        bytes_accessed=y1p.size * 2 + w2.size * 2 + n * m_img * cpad * 2 + n * 2 * cpad * 4,
    )
    return pl.pallas_call(
        kernel,
        out_shape=(
            jax.ShapeDtypeStruct((n * m_img, cpad), jnp.bfloat16),
            jax.ShapeDtypeStruct((n, 2, cpad), jnp.float32),
        ),
        grid_spec=pltpu.PrefetchScalarGridSpec(
            num_scalar_prefetch=0,
            grid=(n,),
            in_specs=[
                pl.BlockSpec((1, ho + 2, wo + 2, cpad), lambda i: (i, 0, 0, 0)),
                pl.BlockSpec((3, 3 * cpad, cpad), lambda i: (0, 0, 0)),   # weights, resident
            ],
            out_specs=(
                pl.BlockSpec((m_img, cpad), lambda i: (i, 0)),
                pl.BlockSpec((1, 2, cpad), lambda i: (i, 0, 0)),
            ),
        ),
        compiler_params=pltpu.CompilerParams(dimension_semantics=("parallel",)),
        cost_estimate=cost,
    )(y1p, w2)


# --------------------------------------------------------------------------------------------
# Pass D: BN2 + BN(shortcut) + residual add + ReLU
# --------------------------------------------------------------------------------------------
def _bn_add_relu_kernel(y2_ref, ysc_ref, s2_ref, h2_ref, ss_ref, hs_ref, o_ref):
    a = y2_ref[...].astype(jnp.float32) * s2_ref[...] + h2_ref[...]
    b = ysc_ref[...].astype(jnp.float32) * ss_ref[...] + hs_ref[...]
    o_ref[...] = jnp.maximum(a + b, 0.0).astype(o_ref.dtype)


def bn_add_relu_pallas(y2, ysc, scale2, shift2, scale_s, shift_s, *, n, m_img, cpad):
    return pl.pallas_call(
        _bn_add_relu_kernel,
        out_shape=jax.ShapeDtypeStruct((n * m_img, cpad), jnp.float32),
        grid_spec=pltpu.PrefetchScalarGridSpec(
            num_scalar_prefetch=0,
            grid=(n,),
            in_specs=[
                pl.BlockSpec((m_img, cpad), lambda i: (i, 0)),
                pl.BlockSpec((m_img, cpad), lambda i: (i, 0)),
                pl.BlockSpec((1, cpad), lambda i: (0, 0)),
                pl.BlockSpec((1, cpad), lambda i: (0, 0)),
                pl.BlockSpec((1, cpad), lambda i: (0, 0)),
                pl.BlockSpec((1, cpad), lambda i: (0, 0)),
            ],
            out_specs=pl.BlockSpec((m_img, cpad), lambda i: (i, 0)),
        ),
        compiler_params=pltpu.CompilerParams(dimension_semantics=("parallel",)),
    )(y2, ysc, scale2, shift2, scale_s, shift_s)


# --------------------------------------------------------------------------------------------
# JAX glue
# --------------------------------------------------------------------------------------------
def _pad_cols(a, c_to, fill=0.0):
    return jnp.pad(a, ((0, 0), (0, c_to - a.shape[1])), constant_values=fill)


def _bn_scale_shift(stats, gamma, beta, inv_m):
    """stats: (2, C) f32 [sum; sum of squares] -> per-channel (scale, shift), f32."""
    mean = stats[0:1, :] * inv_m
    var = jnp.maximum(stats[1:2, :] * inv_m - mean * mean, 0.0)
    scale = gamma * jax.lax.rsqrt(var + BN_EPS)
    return scale, beta - mean * scale


@jax.jit
def resblock_conv1x_forward(x_nchw, params):
    x = jnp.transpose(x_nchw, (0, 2, 3, 1)).astype(jnp.float32)        # NHWC
    n, h, w, cin = x.shape
    cout = params["w1"].shape[-1]
    assert h % 2 == 0 and w % 2 == 0, "demo kernel assumes even spatial dims"
    ho, wo = h // 2, w // 2
    # wo % 8 == 0 keeps the in-kernel (ho, wo, K) <-> (ho*wo, K) reshapes sublane-aligned.
    assert wo % 8 == 0, "demo kernel assumes output width is a multiple of 8"
    m = n * ho * wo
    inv_m = 1.0 / m
    cpad = _round_up(cout, 128)                                        # lane-dense Cout

    # stride-2 phase decomposition of the padded input (one cheap XLA pass; replaces HBM im2col)
    x_pad = jnp.pad(x, ((0, 0), (1, 1), (1, 1), (0, 0))).astype(jnp.bfloat16)
    xp = [x_pad[:, p::2, q::2, :] for p in (0, 1) for q in (0, 1)]     # each (n, ho+1, wo+1, cin)

    # weights: bf16, Cout padded to cpad (zero columns)
    w1 = jnp.zeros((9, cin, cpad), jnp.float32).at[:, :, :cout].set(params["w1"]).astype(jnp.bfloat16)
    ws = jnp.zeros((cin, cpad), jnp.float32).at[:, :cout].set(params["ws"][0]).astype(jnp.bfloat16)
    w2r = params["w2"].reshape(3, 3, cout, cout)
    w2 = (jnp.zeros((3, 3, cpad, cpad), jnp.float32).at[:, :, :cout, :cout].set(w2r)
          .reshape(3, 3 * cpad, cpad).astype(jnp.bfloat16))

    # pass A: conv1 + shortcut + per-image stats
    y1_raw, ysc_raw, st1 = conv1_shortcut_pallas(xp, w1, ws, ho=ho, wo=wo, cpad=cpad)
    st1 = jnp.sum(st1, axis=0)                                          # (2, 2*cpad)
    scale1, shift1 = _bn_scale_shift(st1[:, :cpad], _pad_cols(params["g1"], cpad, 1.0),
                                     _pad_cols(params["b1"], cpad, 0.0), inv_m)
    scale_s, shift_s = _bn_scale_shift(st1[:, cpad:], _pad_cols(params["gs"], cpad, 1.0),
                                       _pad_cols(params["bs"], cpad, 0.0), inv_m)

    # pass B: BN1 + ReLU written as a zero-bordered padded image (conv2's input)
    y1p = bn_relu_pad_pallas(y1_raw, scale1, shift1, n=n, ho=ho, wo=wo, cpad=cpad)

    # pass C: conv2 + per-image stats
    y2_raw, st2 = conv2_pallas(y1p, w2, ho=ho, wo=wo, cpad=cpad)
    st2 = jnp.sum(st2, axis=0)                                          # (2, cpad)
    scale2, shift2 = _bn_scale_shift(st2, _pad_cols(params["g2"], cpad, 1.0),
                                     _pad_cols(params["b2"], cpad, 0.0), inv_m)

    # pass D: BN2 + BN(shortcut) + add + ReLU
    out = bn_add_relu_pallas(y2_raw, ysc_raw, scale2, shift2, scale_s, shift_s,
                             n=n, m_img=ho * wo, cpad=cpad)
    out = out.reshape(n, ho, wo, cpad)[:, :, :, :cout]
    return jnp.transpose(out, (0, 3, 1, 2))                             # back to NCHW


# ---------------------- pure-JAX reference (NCHW, lax.conv, f32) ----------------- #
def _ref_forward(x_nchw, params):
    dn = ("NCHW", "OIHW", "NCHW")

    def conv(x, w_taps, k, stride, pad):
        cin, cout = w_taps.shape[1], w_taps.shape[2]
        w_oihw = w_taps.reshape(k, k, cin, cout).transpose(3, 2, 0, 1)
        return jax.lax.conv_general_dilated(
            x, w_oihw, (stride, stride), ((pad, pad), (pad, pad)),
            dimension_numbers=dn, precision=jax.lax.Precision.HIGHEST,
        )

    def bn(x, g, b):
        mean = x.mean(axis=(0, 2, 3), keepdims=True)
        var = jnp.mean(jnp.square(x - mean), axis=(0, 2, 3), keepdims=True)
        g = g.reshape(1, -1, 1, 1)
        b = b.reshape(1, -1, 1, 1)
        return (x - mean) / jnp.sqrt(var + BN_EPS) * g + b

    o1 = jax.nn.relu(bn(conv(x_nchw, params["w1"], 3, 2, 1), params["g1"], params["b1"]))
    o1 = bn(conv(o1, params["w2"], 3, 1, 1), params["g2"], params["b2"])
    o2 = bn(conv(x_nchw, params["ws"], 1, 2, 0), params["gs"], params["bs"])
    return jax.nn.relu(o1 + o2)


# ---------------------------------- main ------------------------------------ #
if __name__ == "__main__":
    in_ch, out_ch = 4, 8
    n, h, w = 2, 16, 16

    key = jax.random.PRNGKey(0)
    kx, kw1, kw2, kws = jax.random.split(key, 4)

    def bf16_representable(a):
        # inputs/weights exactly representable in bf16 so the bf16 MXU path matches the f32 ref
        return a.astype(jnp.bfloat16).astype(jnp.float32)

    x = bf16_representable(jax.random.normal(kx, (n, in_ch, h, w), jnp.float32))

    params = {
        "w1": bf16_representable(jax.random.normal(kw1, (9, in_ch, out_ch), jnp.float32) * 0.2),
        "w2": bf16_representable(jax.random.normal(kw2, (9, out_ch, out_ch), jnp.float32) * 0.2),
        "ws": bf16_representable(jax.random.normal(kws, (1, in_ch, out_ch), jnp.float32) * 0.2),
        "g1": jnp.ones((1, out_ch), jnp.float32),
        "b1": jnp.zeros((1, out_ch), jnp.float32),
        "g2": jnp.ones((1, out_ch), jnp.float32),
        "b2": jnp.zeros((1, out_ch), jnp.float32),
        "gs": jnp.ones((1, out_ch), jnp.float32),
        "bs": jnp.zeros((1, out_ch), jnp.float32),
    }

    out = jax.block_until_ready(resblock_conv1x_forward(x, params))
    assert out.shape == (n, out_ch, h // 2, w // 2), out.shape

    ref = jax.block_until_ready(_ref_forward(x, params))
    assert jnp.allclose(out, ref, rtol=2e-2, atol=2e-2), float(jnp.max(jnp.abs(out - ref)))

    print("KERNEL_OK")
</pallas_src>

<mosaic_0001>
module attributes {stable_mosaic.version = 11 : i64} {
  func.func @_conv1_shortcut_kernel(%arg0: i32, %arg1: memref<1x9x9x4xbf16, #tpu.memory_space<vmem>>, %arg2: memref<1x9x9x4xbf16, #tpu.memory_space<vmem>>, %arg3: memref<1x9x9x4xbf16, #tpu.memory_space<vmem>>, %arg4: memref<1x9x9x4xbf16, #tpu.memory_space<vmem>>, %arg5: memref<9x4x128xbf16, #tpu.memory_space<vmem>>, %arg6: memref<4x128xbf16, #tpu.memory_space<vmem>>, %arg7: memref<64x128xbf16, #tpu.memory_space<vmem>>, %arg8: memref<64x128xbf16, #tpu.memory_space<vmem>>, %arg9: memref<1x2x256xf32, #tpu.memory_space<vmem>>) attributes {dimension_semantics = [#tpu.dimension_semantics<parallel>], iteration_bounds = array<i64: 2>, scalar_prefetch = 0 : i64, scratch_operands = 0 : i64, tpu.core_type = #tpu.core_type<tc>, window_params = [{transform_indices = @transform_0, window_bounds = array<i64: 1, 9, 9, 4>}, {transform_indices = @transform_1, window_bounds = array<i64: 1, 9, 9, 4>}, {transform_indices = @transform_2, window_bounds = array<i64: 1, 9, 9, 4>}, {transform_indices = @transform_3, window_bounds = array<i64: 1, 9, 9, 4>}, {pipeline_mode = #tpu.pipeline_mode<synchronous>, transform_indices = @transform_4, window_bounds = array<i64: 9, 4, 128>}, {pipeline_mode = #tpu.pipeline_mode<synchronous>, transform_indices = @transform_5, window_bounds = array<i64: 4, 128>}, {transform_indices = @transform_6, window_bounds = array<i64: 64, 128>}, {transform_indices = @transform_7, window_bounds = array<i64: 64, 128>}, {transform_indices = @transform_8, window_bounds = array<i64: 1, 2, 256>}]} {
    %c0 = arith.constant 0 : index
    %c0_0 = arith.constant 0 : index
    %c0_1 = arith.constant 0 : index
    %c0_2 = arith.constant 0 : index
    %0 = vector.load %arg1[%c0, %c0_0, %c0_1, %c0_2] : memref<1x9x9x4xbf16, #tpu.memory_space<vmem>>, vector<1x9x9x4xbf16>
    %1 = vector.shape_cast %0 : vector<1x9x9x4xbf16> to vector<9x9x4xbf16>
    %c0_3 = arith.constant 0 : index
    %c0_4 = arith.constant 0 : index
    %c0_5 = arith.constant 0 : index
    %c0_6 = arith.constant 0 : index
    %2 = vector.load %arg2[%c0_3, %c0_4, %c0_5, %c0_6] : memref<1x9x9x4xbf16, #tpu.memory_space<vmem>>, vector<1x9x9x4xbf16>
    %3 = vector.shape_cast %2 : vector<1x9x9x4xbf16> to vector<9x9x4xbf16>
    %c0_7 = arith.constant 0 : index
    %c0_8 = arith.constant 0 : index
    %c0_9 = arith.constant 0 : index
    %c0_10 = arith.constant 0 : index
    %4 = vector.load %arg3[%c0_7, %c0_8, %c0_9, %c0_10] : memref<1x9x9x4xbf16, #tpu.memory_space<vmem>>, vector<1x9x9x4xbf16>
    %5 = vector.shape_cast %4 : vector<1x9x9x4xbf16> to vector<9x9x4xbf16>
    %c0_11 = arith.constant 0 : index
    %c0_12 = arith.constant 0 : index
    %c0_13 = arith.constant 0 : index
    %c0_14 = arith.constant 0 : index
    %6 = vector.load %arg4[%c0_11, %c0_12, %c0_13, %c0_14] : memref<1x9x9x4xbf16, #tpu.memory_space<vmem>>, vector<1x9x9x4xbf16>
    %7 = vector.shape_cast %6 : vector<1x9x9x4xbf16> to vector<9x9x4xbf16>
    %cst = arith.constant 0.000000e+00 : f32
    %8 = vector.broadcast %cst : f32 to vector<64x128xf32>
    %9 = vector.extract_strided_slice %1 {offsets = [0, 0, 0], sizes = [8, 8, 4], strides = [1, 1, 1]} : vector<9x9x4xbf16> to vector<8x8x4xbf16>
    %10 = vector.shape_cast %9 : vector<8x8x4xbf16> to vector<64x4xbf16>
    %c0_15 = arith.constant 0 : index
    %c0_16 = arith.constant 0 : index
    %c0_17 = arith.constant 0 : index
    %11 = vector.load %arg5[%c0_15, %c0_16, %c0_17] : memref<9x4x128xbf16, #tpu.memory_space<vmem>>, vector<1x4x128xbf16>
    %12 = vector.shape_cast %11 : vector<1x4x128xbf16> to vector<4x128xbf16>
    %cst_18 = arith.constant dense<0.000000e+00> : vector<64x128xf32>
    %13 = tpu.matmul %10, %12, %cst_18 {dimension_numbers = #tpu.dot_dimension_numbers<[1], [0], [0], [1], [0, 0, 1, 1], [], []>} : vector<64x4xbf16>, vector<4x128xbf16>, vector<64x128xf32> -> vector<64x128xf32>
    %14 = arith.addf %8, %13 : vector<64x128xf32>
    %15 = vector.extract_strided_slice %3 {offsets = [0, 0, 0], sizes = [8, 8, 4], strides = [1, 1, 1]} : vector<9x9x4xbf16> to vector<8x8x4xbf16>
    %16 = vector.shape_cast %15 : vector<8x8x4xbf16> to vector<64x4xbf16>
    %c1 = arith.constant 1 : index
    %c0_19 = arith.constant 0 : index
    %c0_20 = arith.constant 0 : index
    %17 = vector.load %arg5[%c1, %c0_19, %c0_20] : memref<9x4x128xbf16, #tpu.memory_space<vmem>>, vector<1x4x128xbf16>
    %18 = vector.shape_cast %17 : vector<1x4x128xbf16> to vector<4x128xbf16>
    %cst_21 = arith.constant dense<0.000000e+00> : vector<64x128xf32>
    %19 = tpu.matmul %16, %18, %cst_21 {dimension_numbers = #tpu.dot_dimension_numbers<[1], [0], [0], [1], [0, 0, 1, 1], [], []>} : vector<64x4xbf16>, vector<4x128xbf16>, vector<64x128xf32> -> vector<64x128xf32>
    %20 = arith.addf %14, %19 : vector<64x128xf32>
    %21 = vector.extract_strided_slice %1 {offsets = [0, 1, 0], sizes = [8, 8, 4], strides = [1, 1, 1]} : vector<9x9x4xbf16> to vector<8x8x4xbf16>
    %22 = vector.shape_cast %21 : vector<8x8x4xbf16> to vector<64x4xbf16>
    %c2 = arith.constant 2 : index
    %c0_22 = arith.constant 0 : index
    %c0_23 = arith.constant 0 : index
    %23 = vector.load %arg5[%c2, %c0_22, %c0_23] : memref<9x4x128xbf16, #tpu.memory_space<vmem>>, vector<1x4x128xbf16>
    %24 = vector.shape_cast %23 : vector<1x4x128xbf16> to vector<4x128xbf16>
    %cst_24 = arith.constant dense<0.000000e+00> : vector<64x128xf32>
    %25 = tpu.matmul %22, %24, %cst_24 {dimension_numbers = #tpu.dot_dimension_numbers<[1], [0], [0], [1], [0, 0, 1, 1], [], []>} : vector<64x4xbf16>, vector<4x128xbf16>, vector<64x128xf32> -> vector<64x128xf32>
    %26 = arith.addf %20, %25 : vector<64x128xf32>
    %27 = vector.extract_strided_slice %5 {offsets = [0, 0, 0], sizes = [8, 8, 4], strides = [1, 1, 1]} : vector<9x9x4xbf16> to vector<8x8x4xbf16>
    %28 = vector.shape_cast %27 : vector<8x8x4xbf16> to vector<64x4xbf16>
    %c3 = arith.constant 3 : index
    %c0_25 = arith.constant 0 : index
    %c0_26 = arith.constant 0 : index
    %29 = vector.load %arg5[%c3, %c0_25, %c0_26] : memref<9x4x128xbf16, #tpu.memory_space<vmem>>, vector<1x4x128xbf16>
    %30 = vector.shape_cast %29 : vector<1x4x128xbf16> to vector<4x128xbf16>
    %cst_27 = arith.constant dense<0.000000e+00> : vector<64x128xf32>
    %31 = tpu.matmul %28, %30, %cst_27 {dimension_numbers = #tpu.dot_dimension_numbers<[1], [0], [0], [1], [0, 0, 1, 1], [], []>} : vector<64x4xbf16>, vector<4x128xbf16>, vector<64x128xf32> -> vector<64x128xf32>
    %32 = arith.addf %26, %31 : vector<64x128xf32>
    %33 = vector.extract_strided_slice %7 {offsets = [0, 0, 0], sizes = [8, 8, 4], strides = [1, 1, 1]} : vector<9x9x4xbf16> to vector<8x8x4xbf16>
    %34 = vector.shape_cast %33 : vector<8x8x4xbf16> to vector<64x4xbf16>
    %c4 = arith.constant 4 : index
    %c0_28 = arith.constant 0 : index
    %c0_29 = arith.constant 0 : index
    %35 = vector.load %arg5[%c4, %c0_28, %c0_29] : memref<9x4x128xbf16, #tpu.memory_space<vmem>>, vector<1x4x128xbf16>
    %36 = vector.shape_cast %35 : vector<1x4x128xbf16> to vector<4x128xbf16>
    %cst_30 = arith.constant dense<0.000000e+00> : vector<64x128xf32>
    %37 = tpu.matmul %34, %36, %cst_30 {dimension_numbers = #tpu.dot_dimension_numbers<[1], [0], [0], [1], [0, 0, 1, 1], [], []>} : vector<64x4xbf16>, vector<4x128xbf16>, vector<64x128xf32> -> vector<64x128xf32>
    %38 = arith.addf %32, %37 : vector<64x128xf32>
    %39 = vector.extract_strided_slice %5 {offsets = [0, 1, 0], sizes = [8, 8, 4], strides = [1, 1, 1]} : vector<9x9x4xbf16> to vector<8x8x4xbf16>
    %40 = vector.shape_cast %39 : vector<8x8x4xbf16> to vector<64x4xbf16>
    %c5 = arith.constant 5 : index
    %c0_31 = arith.constant 0 : index
    %c0_32 = arith.constant 0 : index
    %41 = vector.load %arg5[%c5, %c0_31, %c0_32] : memref<9x4x128xbf16, #tpu.memory_space<vmem>>, vector<1x4x128xbf16>
    %42 = vector.shape_cast %41 : vector<1x4x128xbf16> to vector<4x128xbf16>
    %cst_33 = arith.constant dense<0.000000e+00> : vector<64x128xf32>
    %43 = tpu.matmul %40, %42, %cst_33 {dimension_numbers = #tpu.dot_dimension_numbers<[1], [0], [0], [1], [0, 0, 1, 1], [], []>} : vector<64x4xbf16>, vector<4x128xbf16>, vector<64x128xf32> -> vector<64x128xf32>
    %44 = arith.addf %38, %43 : vector<64x128xf32>
    %45 = vector.extract_strided_slice %1 {offsets = [1, 0, 0], sizes = [8, 8, 4], strides = [1, 1, 1]} : vector<9x9x4xbf16> to vector<8x8x4xbf16>
    %46 = vector.shape_cast %45 : vector<8x8x4xbf16> to vector<64x4xbf16>
    %c6 = arith.constant 6 : index
    %c0_34 = arith.constant 0 : index
    %c0_35 = arith.constant 0 : index
    %47 = vector.load %arg5[%c6, %c0_34, %c0_35] : memref<9x4x128xbf16, #tpu.memory_space<vmem>>, vector<1x4x128xbf16>
    %48 = vector.shape_cast %47 : vector<1x4x128xbf16> to vector<4x128xbf16>
    %cst_36 = arith.constant dense<0.000000e+00> : vector<64x128xf32>
    %49 = tpu.matmul %46, %48, %cst_36 {dimension_numbers = #tpu.dot_dimension_numbers<[1], [0], [0], [1], [0, 0, 1, 1], [], []>} : vector<64x4xbf16>, vector<4x128xbf16>, vector<64x128xf32> -> vector<64x128xf32>
    %50 = arith.addf %44, %49 : vector<64x128xf32>
    %51 = vector.extract_strided_slice %3 {offsets = [1, 0, 0], sizes = [8, 8, 4], strides = [1, 1, 1]} : vector<9x9x4xbf16> to vector<8x8x4xbf16>
    %52 = vector.shape_cast %51 : vector<8x8x4xbf16> to vector<64x4xbf16>
    %c7 = arith.constant 7 : index
    %c0_37 = arith.constant 0 : index
    %c0_38 = arith.constant 0 : index
    %53 = vector.load %arg5[%c7, %c0_37, %c0_38] : memref<9x4x128xbf16, #tpu.memory_space<vmem>>, vector<1x4x128xbf16>
    %54 = vector.shape_cast %53 : vector<1x4x128xbf16> to vector<4x128xbf16>
    %cst_39 = arith.constant dense<0.000000e+00> : vector<64x128xf32>
    %55 = tpu.matmul %52, %54, %cst_39 {dimension_numbers = #tpu.dot_dimension_numbers<[1], [0], [0], [1], [0, 0, 1, 1], [], []>} : vector<64x4xbf16>, vector<4x128xbf16>, vector<64x128xf32> -> vector<64x128xf32>
    %56 = arith.addf %50, %55 : vector<64x128xf32>
    %57 = vector.extract_strided_slice %1 {offsets = [1, 1, 0], sizes = [8, 8, 4], strides = [1, 1, 1]} : vector<9x9x4xbf16> to vector<8x8x4xbf16>
    %58 = vector.shape_cast %57 : vector<8x8x4xbf16> to vector<64x4xbf16>
    %c8 = arith.constant 8 : index
    %c0_40 = arith.constant 0 : index
    %c0_41 = arith.constant 0 : index
    %59 = vector.load %arg5[%c8, %c0_40, %c0_41] : memref<9x4x128xbf16, #tpu.memory_space<vmem>>, vector<1x4x128xbf16>
    %60 = vector.shape_cast %59 : vector<1x4x128xbf16> to vector<4x128xbf16>
    %cst_42 = arith.constant dense<0.000000e+00> : vector<64x128xf32>
    %61 = tpu.matmul %58, %60, %cst_42 {dimension_numbers = #tpu.dot_dimension_numbers<[1], [0], [0], [1], [0, 0, 1, 1], [], []>} : vector<64x4xbf16>, vector<4x128xbf16>, vector<64x128xf32> -> vector<64x128xf32>
    %62 = arith.addf %56, %61 : vector<64x128xf32>
    %63 = vector.extract_strided_slice %7 {offsets = [0, 0, 0], sizes = [8, 8, 4], strides = [1, 1, 1]} : vector<9x9x4xbf16> to vector<8x8x4xbf16>
    %64 = vector.shape_cast %63 : vector<8x8x4xbf16> to vector<64x4xbf16>
    %c0_43 = arith.constant 0 : index
    %c0_44 = arith.constant 0 : index
    %65 = vector.load %arg6[%c0_43, %c0_44] : memref<4x128xbf16, #tpu.memory_space<vmem>>, vector<4x128xbf16>
    %cst_45 = arith.constant dense<0.000000e+00> : vector<64x128xf32>
    %66 = tpu.matmul %64, %65, %cst_45 {dimension_numbers = #tpu.dot_dimension_numbers<[1], [0], [0], [1], [0, 0, 1, 1], [], []>} : vector<64x4xbf16>, vector<4x128xbf16>, vector<64x128xf32> -> vector<64x128xf32>
    %67 = arith.truncf %62 : vector<64x128xf32> to vector<64x128xbf16>
    %c0_46 = arith.constant 0 : index
    %c0_47 = arith.constant 0 : index
    %68 = vector.load %arg7[%c0_46, %c0_47] : memref<64x128xbf16, #tpu.memory_space<vmem>>, vector<64x128xbf16>
    tpu.vector_store %arg7[%c0_46, %c0_47], %67 {strides = array<i32>} : memref<64x128xbf16, #tpu.memory_space<vmem>>, vector<64x128xbf16>,
    %69 = arith.truncf %66 : vector<64x128xf32> to vector<64x128xbf16>
    %c0_48 = arith.constant 0 : index
    %c0_49 = arith.constant 0 : index
    %70 = vector.load %arg8[%c0_48, %c0_49] : memref<64x128xbf16, #tpu.memory_space<vmem>>, vector<64x128xbf16>
    tpu.vector_store %arg8[%c0_48, %c0_49], %69 {strides = array<i32>} : memref<64x128xbf16, #tpu.memory_space<vmem>>, vector<64x128xbf16>,
    %cst_50 = arith.constant dense<0.000000e+00> : vector<128xf32>
    %71 = vector.multi_reduction <add>, %62, %cst_50 [0] : vector<64x128xf32> to vector<128xf32>
    %72 = vector.shape_cast %71 : vector<128xf32> to vector<1x128xf32>
    %cst_51 = arith.constant dense<0.000000e+00> : vector<128xf32>
    %73 = vector.multi_reduction <add>, %66, %cst_51 [0] : vector<64x128xf32> to vector<128xf32>
    %74 = vector.shape_cast %73 : vector<128xf32> to vector<1x128xf32>
    %75 = tpu.concatenate %72, %74 in 1 : vector<1x128xf32>, vector<1x128xf32> -> vector<1x256xf32>
    %76 = arith.mulf %62, %62 : vector<64x128xf32>
    %cst_52 = arith.constant dense<0.000000e+00> : vector<128xf32>
    %77 = vector.multi_reduction <add>, %76, %cst_52 [0] : vector<64x128xf32> to vector<128xf32>
    %78 = vector.shape_cast %77 : vector<128xf32> to vector<1x128xf32>
    %79 = arith.mulf %66, %66 : vector<64x128xf32>
    %cst_53 = arith.constant dense<0.000000e+00> : vector<128xf32>
    %80 = vector.multi_reduction <add>, %79, %cst_53 [0] : vector<64x128xf32> to vector<128xf32>
    %81 = vector.shape_cast %80 : vector<128xf32> to vector<1x128xf32>
    %82 = tpu.concatenate %78, %81 in 1 : vector<1x128xf32>, vector<1x128xf32> -> vector<1x256xf32>
    %83 = tpu.concatenate %75, %82 in 0 : vector<1x256xf32>, vector<1x256xf32> -> vector<2x256xf32>
    %c0_54 = arith.constant 0 : index
    %c0_55 = arith.constant 0 : index
    %c0_56 = arith.constant 0 : index
    %84 = vector.load %arg9[%c0_54, %c0_55, %c0_56] : memref<1x2x256xf32, #tpu.memory_space<vmem>>, vector<1x2x256xf32>
    %85 = vector.shape_cast %84 : vector<1x2x256xf32> to vector<2x256xf32>
    %86 = vector.shape_cast %83 : vector<2x256xf32> to vector<1x2x256xf32>
    tpu.vector_store %arg9[%c0_54, %c0_55, %c0_56], %86 {strides = array<i32>} : memref<1x2x256xf32, #tpu.memory_space<vmem>>, vector<1x2x256xf32>,
    return
  }
  func.func @transform_0(%arg0: i32) -> (i32, i32, i32, i32) {
    %c0_i32 = arith.constant 0 : i32
    %c0_i32_0 = arith.constant 0 : i32
    %c0_i32_1 = arith.constant 0 : i32
    %c0_i32_2 = arith.constant 0 : i32
    return %arg0, %c0_i32, %c0_i32_0, %c0_i32_1 : i32, i32, i32, i32
  }
  func.func @transform_1(%arg0: i32) -> (i32, i32, i32, i32) {
    %c0_i32 = arith.constant 0 : i32
    %c0_i32_0 = arith.constant 0 : i32
    %c0_i32_1 = arith.constant 0 : i32
    %c0_i32_2 = arith.constant 0 : i32
    return %arg0, %c0_i32, %c0_i32_0, %c0_i32_1 : i32, i32, i32, i32
  }
  func.func @transform_2(%arg0: i32) -> (i32, i32, i32, i32) {
    %c0_i32 = arith.constant 0 : i32
    %c0_i32_0 = arith.constant 0 : i32
    %c0_i32_1 = arith.constant 0 : i32
    %c0_i32_2 = arith.constant 0 : i32
    return %arg0, %c0_i32, %c0_i32_0, %c0_i32_1 : i32, i32, i32, i32
  }
  func.func @transform_3(%arg0: i32) -> (i32, i32, i32, i32) {
    %c0_i32 = arith.constant 0 : i32
    %c0_i32_0 = arith.constant 0 : i32
    %c0_i32_1 = arith.constant 0 : i32
    %c0_i32_2 = arith.constant 0 : i32
    return %arg0, %c0_i32, %c0_i32_0, %c0_i32_1 : i32, i32, i32, i32
  }
  func.func @transform_4(%arg0: i32) -> (i32, i32, i32) {
    %c0_i32 = arith.constant 0 : i32
    %c0_i32_0 = arith.constant 0 : i32
    %c0_i32_1 = arith.constant 0 : i32
    %c0_i32_2 = arith.constant 0 : i32
    return %c0_i32, %c0_i32_0, %c0_i32_1 : i32, i32, i32
  }
  func.func @transform_5(%arg0: i32) -> (i32, i32) {
    %c0_i32 = arith.constant 0 : i32
    %c0_i32_0 = arith.constant 0 : i32
    %c0_i32_1 = arith.constant 0 : i32
    return %c0_i32, %c0_i32_0 : i32, i32
  }
  func.func @transform_6(%arg0: i32) -> (i32, i32) {
    %c0_i32 = arith.constant 0 : i32
    %c0_i32_0 = arith.constant 0 : i32
    return %arg0, %c0_i32 : i32, i32
  }
  func.func @transform_7(%arg0: i32) -> (i32, i32) {
    %c0_i32 = arith.constant 0 : i32
    %c0_i32_0 = arith.constant 0 : i32
    return %arg0, %c0_i32 : i32, i32
  }
  func.func @transform_8(%arg0: i32) -> (i32, i32, i32) {
    %c0_i32 = arith.constant 0 : i32
    %c0_i32_0 = arith.constant 0 : i32
    %c0_i32_1 = arith.constant 0 : i32
    return %arg0, %c0_i32, %c0_i32_0 : i32, i32, i32
  }
}

module attributes {stable_mosaic.version = 11 : i64} {
  func.func @_bn_relu_pad_kernel(%arg0: i32, %arg1: memref<64x128xbf16, #tpu.memory_space<vmem>>, %arg2: memref<1x128xf32, #tpu.memory_space<vmem>>, %arg3: memref<1x128xf32, #tpu.memory_space<vmem>>, %arg4: memref<1x10x10x128xbf16, #tpu.memory_space<vmem>>) attributes {dimension_semantics = [#tpu.dimension_semantics<parallel>], iteration_bounds = array<i64: 2>, scalar_prefetch = 0 : i64, scratch_operands = 0 : i64, tpu.core_type = #tpu.core_type<tc>, window_params = [{transform_indices = @transform_0, window_bounds = array<i64: 64, 128>}, {pipeline_mode = #tpu.pipeline_mode<synchronous>, transform_indices = @transform_1, window_bounds = array<i64: 1, 128>}, {pipeline_mode = #tpu.pipeline_mode<synchronous>, transform_indices = @transform_2, window_bounds = array<i64: 1, 128>}, {transform_indices = @transform_3, window_bounds = array<i64: 1, 10, 10, 128>}]} {
    %c0 = arith.constant 0 : index
    %c0_0 = arith.constant 0 : index
    %0 = vector.load %arg1[%c0, %c0_0] : memref<64x128xbf16, #tpu.memory_space<vmem>>, vector<64x128xbf16>
    %1 = arith.extf %0 : vector<64x128xbf16> to vector<64x128xf32>
    %c0_1 = arith.constant 0 : index
    %c0_2 = arith.constant 0 : index
    %2 = vector.load %arg2[%c0_1, %c0_2] : memref<1x128xf32, #tpu.memory_space<vmem>>, vector<1x128xf32>
    %3 = vector.broadcast %2 : vector<1x128xf32> to vector<64x128xf32>
    %4 = arith.mulf %1, %3 : vector<64x128xf32>
    %c0_3 = arith.constant 0 : index
    %c0_4 = arith.constant 0 : index
    %5 = vector.load %arg3[%c0_3, %c0_4] : memref<1x128xf32, #tpu.memory_space<vmem>>, vector<1x128xf32>
    %6 = vector.broadcast %5 : vector<1x128xf32> to vector<64x128xf32>
    %7 = arith.addf %4, %6 : vector<64x128xf32>
    %cst = arith.constant 0.000000e+00 : f32
    %8 = vector.broadcast %cst : f32 to vector<64x128xf32>
    %9 = arith.maximumf %7, %8 : vector<64x128xf32>
    %cst_5 = arith.constant 0.000000e+00 : bf16
    %10 = vector.broadcast %cst_5 : bf16 to vector<1x10x10x128xbf16>
    %c0_6 = arith.constant 0 : index
    %c0_7 = arith.constant 0 : index
    %c0_8 = arith.constant 0 : index
    %c0_9 = arith.constant 0 : index
    %11 = vector.load %arg4[%c0_6, %c0_7, %c0_8, %c0_9] : memref<1x10x10x128xbf16, #tpu.memory_space<vmem>>, vector<1x10x10x128xbf16>
    tpu.vector_store %arg4[%c0_6, %c0_7, %c0_8, %c0_9], %10 {strides = array<i32>} : memref<1x10x10x128xbf16, #tpu.memory_space<vmem>>, vector<1x10x10x128xbf16>,
    %12 = vector.shape_cast %9 : vector<64x128xf32> to vector<8x8x128xf32>
    %13 = arith.truncf %12 : vector<8x8x128xf32> to vector<8x8x128xbf16>
    %c0_10 = arith.constant 0 : index
    %c1 = arith.constant 1 : index
    %c1_11 = arith.constant 1 : index
    %c0_12 = arith.constant 0 : index
    %14 = vector.load %arg4[%c0_10, %c1, %c1_11, %c0_12] : memref<1x10x10x128xbf16, #tpu.memory_space<vmem>>, vector<1x8x8x128xbf16>
    %15 = vector.shape_cast %14 : vector<1x8x8x128xbf16> to vector<8x8x128xbf16>
    %16 = vector.shape_cast %13 : vector<8x8x128xbf16> to vector<1x8x8x128xbf16>
    tpu.vector_store %arg4[%c0_10, %c1, %c1_11, %c0_12], %16 {strides = array<i32>} : memref<1x10x10x128xbf16, #tpu.memory_space<vmem>>, vector<1x8x8x128xbf16>,
    return
  }
  func.func @transform_0(%arg0: i32) -> (i32, i32) {
    %c0_i32 = arith.constant 0 : i32
    %c0_i32_0 = arith.constant 0 : i32
    return %arg0, %c0_i32 : i32, i32
  }
  func.func @transform_1(%arg0: i32) -> (i32, i32) {
    %c0_i32 = arith.constant 0 : i32
    %c0_i32_0 = arith.constant 0 : i32
    %c0_i32_1 = arith.constant 0 : i32
    return %c0_i32, %c0_i32_0 : i32, i32
  }
  func.func @transform_2(%arg0: i32) -> (i32, i32) {
    %c0_i32 = arith.constant 0 : i32
    %c0_i32_0 = arith.constant 0 : i32
    %c0_i32_1 = arith.constant 0 : i32
    return %c0_i32, %c0_i32_0 : i32, i32
  }
  func.func @transform_3(%arg0: i32) -> (i32, i32, i32, i32) {
    %c0_i32 = arith.constant 0 : i32
    %c0_i32_0 = arith.constant 0 : i32
    %c0_i32_1 = arith.constant 0 : i32
    %c0_i32_2 = arith.constant 0 : i32
    return %arg0, %c0_i32, %c0_i32_0, %c0_i32_1 : i32, i32, i32, i32
  }
}

module attributes {stable_mosaic.version = 11 : i64} {
  func.func @_conv2_kernel(%arg0: i32, %arg1: memref<1x10x10x128xbf16, #tpu.memory_space<vmem>>, %arg2: memref<3x384x128xbf16, #tpu.memory_space<vmem>>, %arg3: memref<64x128xbf16, #tpu.memory_space<vmem>>, %arg4: memref<1x2x128xf32, #tpu.memory_space<vmem>>) attributes {dimension_semantics = [#tpu.dimension_semantics<parallel>], iteration_bounds = array<i64: 2>, scalar_prefetch = 0 : i64, scratch_operands = 0 : i64, tpu.core_type = #tpu.core_type<tc>, window_params = [{transform_indices = @transform_0, window_bounds = array<i64: 1, 10, 10, 128>}, {pipeline_mode = #tpu.pipeline_mode<synchronous>, transform_indices = @transform_1, window_bounds = array<i64: 3, 384, 128>}, {transform_indices = @transform_2, window_bounds = array<i64: 64, 128>}, {transform_indices = @transform_3, window_bounds = array<i64: 1, 2, 128>}]} {
    %c0 = arith.constant 0 : index
    %c0_0 = arith.constant 0 : index
    %c0_1 = arith.constant 0 : index
    %c0_2 = arith.constant 0 : index
    %0 = vector.load %arg1[%c0, %c0_0, %c0_1, %c0_2] : memref<1x10x10x128xbf16, #tpu.memory_space<vmem>>, vector<1x10x10x128xbf16>
    %1 = vector.shape_cast %0 : vector<1x10x10x128xbf16> to vector<10x10x128xbf16>
    %cst = arith.constant 0.000000e+00 : f32
    %2 = vector.broadcast %cst : f32 to vector<64x128xf32>
    %3 = vector.extract_strided_slice %1 {offsets = [0, 0, 0], sizes = [8, 8, 128], strides = [1, 1, 1]} : vector<10x10x128xbf16> to vector<8x8x128xbf16>
    %4 = vector.extract_strided_slice %1 {offsets = [0, 1, 0], sizes = [8, 8, 128], strides = [1, 1, 1]} : vector<10x10x128xbf16> to vector<8x8x128xbf16>
    %5 = vector.extract_strided_slice %1 {offsets = [0, 2, 0], sizes = [8, 8, 128], strides = [1, 1, 1]} : vector<10x10x128xbf16> to vector<8x8x128xbf16>
    %6 = tpu.concatenate %3, %4, %5 in 2 : vector<8x8x128xbf16>, vector<8x8x128xbf16>, vector<8x8x128xbf16> -> vector<8x8x384xbf16>
    %7 = vector.shape_cast %6 : vector<8x8x384xbf16> to vector<64x384xbf16>
    %c0_3 = arith.constant 0 : index
    %c0_4 = arith.constant 0 : index
    %c0_5 = arith.constant 0 : index
    %8 = vector.load %arg2[%c0_3, %c0_4, %c0_5] : memref<3x384x128xbf16, #tpu.memory_space<vmem>>, vector<1x384x128xbf16>
    %9 = vector.shape_cast %8 : vector<1x384x128xbf16> to vector<384x128xbf16>
    %cst_6 = arith.constant dense<0.000000e+00> : vector<64x128xf32>
    %10 = tpu.matmul %7, %9, %cst_6 {dimension_numbers = #tpu.dot_dimension_numbers<[1], [0], [0], [1], [0, 0, 1, 1], [], []>} : vector<64x384xbf16>, vector<384x128xbf16>, vector<64x128xf32> -> vector<64x128xf32>
    %11 = arith.addf %2, %10 : vector<64x128xf32>
    %12 = vector.extract_strided_slice %1 {offsets = [1, 0, 0], sizes = [8, 8, 128], strides = [1, 1, 1]} : vector<10x10x128xbf16> to vector<8x8x128xbf16>
    %13 = vector.extract_strided_slice %1 {offsets = [1, 1, 0], sizes = [8, 8, 128], strides = [1, 1, 1]} : vector<10x10x128xbf16> to vector<8x8x128xbf16>
    %14 = vector.extract_strided_slice %1 {offsets = [1, 2, 0], sizes = [8, 8, 128], strides = [1, 1, 1]} : vector<10x10x128xbf16> to vector<8x8x128xbf16>
    %15 = tpu.concatenate %12, %13, %14 in 2 : vector<8x8x128xbf16>, vector<8x8x128xbf16>, vector<8x8x128xbf16> -> vector<8x8x384xbf16>
    %16 = vector.shape_cast %15 : vector<8x8x384xbf16> to vector<64x384xbf16>
    %c1 = arith.constant 1 : index
    %c0_7 = arith.constant 0 : index
    %c0_8 = arith.constant 0 : index
    %17 = vector.load %arg2[%c1, %c0_7, %c0_8] : memref<3x384x128xbf16, #tpu.memory_space<vmem>>, vector<1x384x128xbf16>
    %18 = vector.shape_cast %17 : vector<1x384x128xbf16> to vector<384x128xbf16>
    %cst_9 = arith.constant dense<0.000000e+00> : vector<64x128xf32>
    %19 = tpu.matmul %16, %18, %cst_9 {dimension_numbers = #tpu.dot_dimension_numbers<[1], [0], [0], [1], [0, 0, 1, 1], [], []>} : vector<64x384xbf16>, vector<384x128xbf16>, vector<64x128xf32> -> vector<64x128xf32>
    %20 = arith.addf %11, %19 : vector<64x128xf32>
    %21 = vector.extract_strided_slice %1 {offsets = [2, 0, 0], sizes = [8, 8, 128], strides = [1, 1, 1]} : vector<10x10x128xbf16> to vector<8x8x128xbf16>
    %22 = vector.extract_strided_slice %1 {offsets = [2, 1, 0], sizes = [8, 8, 128], strides = [1, 1, 1]} : vector<10x10x128xbf16> to vector<8x8x128xbf16>
    %23 = vector.extract_strided_slice %1 {offsets = [2, 2, 0], sizes = [8, 8, 128], strides = [1, 1, 1]} : vector<10x10x128xbf16> to vector<8x8x128xbf16>
    %24 = tpu.concatenate %21, %22, %23 in 2 : vector<8x8x128xbf16>, vector<8x8x128xbf16>, vector<8x8x128xbf16> -> vector<8x8x384xbf16>
    %25 = vector.shape_cast %24 : vector<8x8x384xbf16> to vector<64x384xbf16>
    %c2 = arith.constant 2 : index
    %c0_10 = arith.constant 0 : index
    %c0_11 = arith.constant 0 : index
    %26 = vector.load %arg2[%c2, %c0_10, %c0_11] : memref<3x384x128xbf16, #tpu.memory_space<vmem>>, vector<1x384x128xbf16>
    %27 = vector.shape_cast %26 : vector<1x384x128xbf16> to vector<384x128xbf16>
    %cst_12 = arith.constant dense<0.000000e+00> : vector<64x128xf32>
    %28 = tpu.matmul %25, %27, %cst_12 {dimension_numbers = #tpu.dot_dimension_numbers<[1], [0], [0], [1], [0, 0, 1, 1], [], []>} : vector<64x384xbf16>, vector<384x128xbf16>, vector<64x128xf32> -> vector<64x128xf32>
    %29 = arith.addf %20, %28 : vector<64x128xf32>
    %30 = arith.truncf %29 : vector<64x128xf32> to vector<64x128xbf16>
    %c0_13 = arith.constant 0 : index
    %c0_14 = arith.constant 0 : index
    %31 = vector.load %arg3[%c0_13, %c0_14] : memref<64x128xbf16, #tpu.memory_space<vmem>>, vector<64x128xbf16>
    tpu.vector_store %arg3[%c0_13, %c0_14], %30 {strides = array<i32>} : memref<64x128xbf16, #tpu.memory_space<vmem>>, vector<64x128xbf16>,
    %cst_15 = arith.constant dense<0.000000e+00> : vector<128xf32>
    %32 = vector.multi_reduction <add>, %29, %cst_15 [0] : vector<64x128xf32> to vector<128xf32>
    %33 = vector.shape_cast %32 : vector<128xf32> to vector<1x128xf32>
    %34 = arith.mulf %29, %29 : vector<64x128xf32>
    %cst_16 = arith.constant dense<0.000000e+00> : vector<128xf32>
    %35 = vector.multi_reduction <add>, %34, %cst_16 [0] : vector<64x128xf32> to vector<128xf32>
    %36 = vector.shape_cast %35 : vector<128xf32> to vector<1x128xf32>
    %37 = tpu.concatenate %33, %36 in 0 : vector<1x128xf32>, vector<1x128xf32> -> vector<2x128xf32>
    %c0_17 = arith.constant 0 : index
    %c0_18 = arith.constant 0 : index
    %c0_19 = arith.constant 0 : index
    %38 = vector.load %arg4[%c0_17, %c0_18, %c0_19] : memref<1x2x128xf32, #tpu.memory_space<vmem>>, vector<1x2x128xf32>
    %39 = vector.shape_cast %38 : vector<1x2x128xf32> to vector<2x128xf32>
    %40 = vector.shape_cast %37 : vector<2x128xf32> to vector<1x2x128xf32>
    tpu.vector_store %arg4[%c0_17, %c0_18, %c0_19], %40 {strides = array<i32>} : memref<1x2x128xf32, #tpu.memory_space<vmem>>, vector<1x2x128xf32>,
    return
  }
  func.func @transform_0(%arg0: i32) -> (i32, i32, i32, i32) {
    %c0_i32 = arith.constant 0 : i32
    %c0_i32_0 = arith.constant 0 : i32
    %c0_i32_1 = arith.constant 0 : i32
    %c0_i32_2 = arith.constant 0 : i32
    return %arg0, %c0_i32, %c0_i32_0, %c0_i32_1 : i32, i32, i32, i32
  }
  func.func @transform_1(%arg0: i32) -> (i32, i32, i32) {
    %c0_i32 = arith.constant 0 : i32
    %c0_i32_0 = arith.constant 0 : i32
    %c0_i32_1 = arith.constant 0 : i32
    %c0_i32_2 = arith.constant 0 : i32
    return %c0_i32, %c0_i32_0, %c0_i32_1 : i32, i32, i32
  }
  func.func @transform_2(%arg0: i32) -> (i32, i32) {
    %c0_i32 = arith.constant 0 : i32
    %c0_i32_0 = arith.constant 0 : i32
    return %arg0, %c0_i32 : i32, i32
  }
  func.func @transform_3(%arg0: i32) -> (i32, i32, i32) {
    %c0_i32 = arith.constant 0 : i32
    %c0_i32_0 = arith.constant 0 : i32
    %c0_i32_1 = arith.constant 0 : i32
    return %arg0, %c0_i32, %c0_i32_0 : i32, i32, i32
  }
}

module attributes {stable_mosaic.version = 11 : i64} {
  func.func @_bn_add_relu_kernel(%arg0: i32, %arg1: memref<64x128xbf16, #tpu.memory_space<vmem>>, %arg2: memref<64x128xbf16, #tpu.memory_space<vmem>>, %arg3: memref<1x128xf32, #tpu.memory_space<vmem>>, %arg4: memref<1x128xf32, #tpu.memory_space<vmem>>, %arg5: memref<1x128xf32, #tpu.memory_space<vmem>>, %arg6: memref<1x128xf32, #tpu.memory_space<vmem>>, %arg7: memref<64x128xf32, #tpu.memory_space<vmem>>) attributes {dimension_semantics = [#tpu.dimension_semantics<parallel>], iteration_bounds = array<i64: 2>, scalar_prefetch = 0 : i64, scratch_operands = 0 : i64, tpu.core_type = #tpu.core_type<tc>, window_params = [{transform_indices = @transform_0, window_bounds = array<i64: 64, 128>}, {transform_indices = @transform_1, window_bounds = array<i64: 64, 128>}, {pipeline_mode = #tpu.pipeline_mode<synchronous>, transform_indices = @transform_2, window_bounds = array<i64: 1, 128>}, {pipeline_mode = #tpu.pipeline_mode<synchronous>, transform_indices = @transform_3, window_bounds = array<i64: 1, 128>}, {pipeline_mode = #tpu.pipeline_mode<synchronous>, transform_indices = @transform_4, window_bounds = array<i64: 1, 128>}, {pipeline_mode = #tpu.pipeline_mode<synchronous>, transform_indices = @transform_5, window_bounds = array<i64: 1, 128>}, {transform_indices = @transform_6, window_bounds = array<i64: 64, 128>}]} {
    %c0 = arith.constant 0 : index
    %c0_0 = arith.constant 0 : index
    %0 = vector.load %arg1[%c0, %c0_0] : memref<64x128xbf16, #tpu.memory_space<vmem>>, vector<64x128xbf16>
    %1 = arith.extf %0 : vector<64x128xbf16> to vector<64x128xf32>
    %c0_1 = arith.constant 0 : index
    %c0_2 = arith.constant 0 : index
    %2 = vector.load %arg3[%c0_1, %c0_2] : memref<1x128xf32, #tpu.memory_space<vmem>>, vector<1x128xf32>
    %3 = vector.broadcast %2 : vector<1x128xf32> to vector<64x128xf32>
    %4 = arith.mulf %1, %3 : vector<64x128xf32>
    %c0_3 = arith.constant 0 : index
    %c0_4 = arith.constant 0 : index
    %5 = vector.load %arg4[%c0_3, %c0_4] : memref<1x128xf32, #tpu.memory_space<vmem>>, vector<1x128xf32>
    %6 = vector.broadcast %5 : vector<1x128xf32> to vector<64x128xf32>
    %7 = arith.addf %4, %6 : vector<64x128xf32>
    %c0_5 = arith.constant 0 : index
    %c0_6 = arith.constant 0 : index
    %8 = vector.load %arg2[%c0_5, %c0_6] : memref<64x128xbf16, #tpu.memory_space<vmem>>, vector<64x128xbf16>
    %9 = arith.extf %8 : vector<64x128xbf16> to vector<64x128xf32>
    %c0_7 = arith.constant 0 : index
    %c0_8 = arith.constant 0 : index
    %10 = vector.load %arg5[%c0_7, %c0_8] : memref<1x128xf32, #tpu.memory_space<vmem>>, vector<1x128xf32>
    %11 = vector.broadcast %10 : vector<1x128xf32> to vector<64x128xf32>
    %12 = arith.mulf %9, %11 : vector<64x128xf32>
    %c0_9 = arith.constant 0 : index
    %c0_10 = arith.constant 0 : index
    %13 = vector.load %arg6[%c0_9, %c0_10] : memref<1x128xf32, #tpu.memory_space<vmem>>, vector<1x128xf32>
    %14 = vector.broadcast %13 : vector<1x128xf32> to vector<64x128xf32>
    %15 = arith.addf %12, %14 : vector<64x128xf32>
    %16 = arith.addf %7, %15 : vector<64x128xf32>
    %cst = arith.constant 0.000000e+00 : f32
    %17 = vector.broadcast %cst : f32 to vector<64x128xf32>
    %18 = arith.maximumf %16, %17 : vector<64x128xf32>
    %c0_11 = arith.constant 0 : index
    %c0_12 = arith.constant 0 : index
    %19 = vector.load %arg7[%c0_11, %c0_12] : memref<64x128xf32, #tpu.memory_space<vmem>>, vector<64x128xf32>
    tpu.vector_store %arg7[%c0_11, %c0_12], %18 {strides = array<i32>} : memref<64x128xf32, #tpu.memory_space<vmem>>, vector<64x128xf32>,
    return
  }
  func.func @transform_0(%arg0: i32) -> (i32, i32) {
    %c0_i32 = arith.constant 0 : i32
    %c0_i32_0 = arith.constant 0 : i32
    return %arg0, %c0_i32 : i32, i32
  }
  func.func @transform_1(%arg0: i32) -> (i32, i32) {
    %c0_i32 = arith.constant 0 : i32
    %c0_i32_0 = arith.constant 0 : i32
    return %arg0, %c0_i32 : i32, i32
  }
  func.func @transform_2(%arg0: i32) -> (i32, i32) {
    %c0_i32 = arith.constant 0 : i32
    %c0_i32_0 = arith.constant 0 : i32
    %c0_i32_1 = arith.constant 0 : i32
    return %c0_i32, %c0_i32_0 : i32, i32
  }
  func.func @transform_3(%arg0: i32) -> (i32, i32) {
    %c0_i32 = arith.constant 0 : i32
    %c0_i32_0 = arith.constant 0 : i32
    %c0_i32_1 = arith.constant 0 : i32
    return %c0_i32, %c0_i32_0 : i32, i32
  }
  func.func @transform_4(%arg0: i32) -> (i32, i32) {
    %c0_i32 = arith.constant 0 : i32
    %c0_i32_0 = arith.constant 0 : i32
    %c0_i32_1 = arith.constant 0 : i32
    return %c0_i32, %c0_i32_0 : i32, i32
  }
  func.func @transform_5(%arg0: i32) -> (i32, i32) {
    %c0_i32 = arith.constant 0 : i32
    %c0_i32_0 = arith.constant 0 : i32
    %c0_i32_1 = arith.constant 0 : i32
    return %c0_i32, %c0_i32_0 : i32, i32
  }
  func.func @transform_6(%arg0: i32) -> (i32, i32) {
    %c0_i32 = arith.constant 0 : i32
    %c0_i32_0 = arith.constant 0 : i32
    return %arg0, %c0_i32 : i32, i32
  }
}

</mosaic_0001>

<bundles_post_ra>
// kernel: resblock_conv1x_forward.5
= control target key start
LH: loop header
LB: loop body
LE: loop exit
PB: predicated region body
PF: predicated region fallthrough
CT: control target
= control target key end

     0   :  { %s588_s12 = smov 0   ;;  %s709_s0 = inlined_call_operand.vmem [shape: bf16[128,128], index: 0, kind: input, shape index: {}]   ;;  %s710_s1 = inlined_call_operand.vmem [shape: f32[1,128], index: 1, kind: input, shape index: {}]   ;;  %s711_s2 = inlined_call_operand.vmem [shape: f32[1,128], index: 2, kind: input, shape index: {}]   ;;  %s712_s3 = inlined_call_operand.vmem [shape: bf16[2,10,10,128], index: 3, kind: output, shape index: {}]  }
   0x1 LB: > { %s470_s13 = sadd.s32 4294967295, %s565_s12   ;;  %p474_p0 = scmp.ge.s32.totalorder %s565_s12, 1  ;;  %s565_s12 = sphi %s588_s12, %s13_s12  }
   0x2   : > { %p138_p1 = scmp.lt.s32.totalorder %s565_s12, 3 }
   0x4   : > { %p139_p2 = pnand %p474_p0, %p138_p1 }
   0x5   : > { %p168_p3 = scmp.lt.s32.totalorder (!%p139_p2), %s470_s13, 1  ;;  %s475_s14 = sshll.u32 (!%p139_p2), %s470_s13, 3  ;;  %v478_v0 = vld [vmem:[%s710_s1] ss:$0 sm:$0xff] (!%p139_p2)  ;;  %v567_v1 = vmov (!%p139_p2), 0   ;;  %vm361_vm0 = vcmask (!%p139_p2), 1043456  }
   0x6   : > { %142 = sbr.rel (%p139_p2) target bundleno = 46 (0x2e), region = 32  ;;  %p163_p4 = scmp.lt.s32.totalorder (!%p139_p2), %s475_s14, 15  ;;  %v479_v10 = vld [vmem:[%s711_s2] ss:$0 sm:$0xff] (!%p139_p2)  ;;  %vm362_vm1 = vsmask.f32 (!%p139_p2), 7938 }
   0x7   : > { %vm367_vm2 = vcmask (!%p139_p2), 1040384   ;;  %vm368_vm3 = vsmask.f32 (!%p139_p2), 256  ;;  %vm635_vm4 = vmand (!%p139_p2), %vm361_vm0, %vm362_vm1 }
   0x8   : > { %vm643_vm5 = vmand (!%p139_p2), %vm367_vm2, %vm368_vm3 }
   0xd   : > { %s718_s13 = smov (!%p168_p3, %s470_s13), 1  ;;  %s720_s14 = smov (!%p163_p4, %s475_s14), 15 }
   0xe   : > { %s549_s15 = smul.u32 80, %s718_s13  ;;  %s476_s16 = sshll.u32 %s720_s14, 2 }
   0xf   : > { %s166_s22 = scalar_lea.vmem %s709_s0, %s476_s16 }
  0x10   : > { %s599_s19 = scalar_lea.vmem %s712_s3, %s549_s15  ;;  %v531_v2 = vld [vmem:[%s166_s22] sm:$0xff]   ;;  %v546_v3 = vld [vmem:[%s166_s22 + $0x8] sm:$0xff]   ;;  %v547_v4 = vld [vmem:[%s166_s22 + $0x10] sm:$0xff]  }
  0x11   : > { %230 = vst [vmem:[%s599_s19 + $0x8] sm:$0xf] %v567_v1  ;;  %228 = vst [vmem:[%s599_s19] sm:$0xf] %v567_v1  ;;  %v532_v5 = vunpack.c.l.bf16 %v531_v2  ;;  %v533_v6 = vunpack.c.h.bf16 %v531_v2  ;;  %v536_v7 = vunpack.c.l.bf16 %v546_v3  ;;  %v537_v8 = vunpack.c.h.bf16 %v546_v3  ;;  %v548_v9 = vld [vmem:[%s166_s22 + $0x18] sm:$0xff]  }
  0x12   : > { %229 = vst [vmem:[%s599_s19 + $0x4] sm:$0x1] %v567_v1  ;;  %231 = vst [vmem:[%s599_s19 + $0xc] sm:$0x1] %v567_v1  ;;  %v540_v11 = vunpack.c.l.bf16 %v547_v4  ;;  %v541_v12 = vunpack.c.h.bf16 %v547_v4  ;;  %v544_v13 = vunpack.c.l.bf16 %v548_v9  ;;  %v545_v14 = vunpack.c.h.bf16 %v548_v9 }
  0x13   : > { %232 = vst [vmem:[%s599_s19 + $0x10] sm:$0xf] %v567_v1  ;;  %233 = vst [vmem:[%s599_s19 + $0x14] sm:$0x1] %v567_v1  ;;  %v197_v15 = vmul.f32 %v532_v5, %v478_v0  ;;  %v198_v16 = vmul.f32 %v533_v6, %v478_v0  ;;  %v199_v17 = vmul.f32 %v536_v7, %v478_v0 }
  0x14   : > { %234 = vst [vmem:[%s599_s19 + $0x18] sm:$0xf] %v567_v1  ;;  %235 = vst [vmem:[%s599_s19 + $0x1c] sm:$0x1] %v567_v1  ;;  %v200_v18 = vmul.f32 %v537_v8, %v478_v0  ;;  %v201_v19 = vmul.f32 %v540_v11, %v478_v0  ;;  %v202_v20 = vmul.f32 %v541_v12, %v478_v0 }
  0x15   : > { %236 = vst [vmem:[%s599_s19 + $0x20] sm:$0xf] %v567_v1  ;;  %237 = vst [vmem:[%s599_s19 + $0x24] sm:$0x1] %v567_v1  ;;  %v203_v21 = vmul.f32 %v544_v13, %v478_v0  ;;  %v204_v22 = vmul.f32 %v545_v14, %v478_v0  ;;  %v212_v23 = vadd.f32 %v479_v10, %v197_v15 }
  0x16   : > { %238 = vst [vmem:[%s599_s19 + $0x28] sm:$0xf] %v567_v1  ;;  %239 = vst [vmem:[%s599_s19 + $0x2c] sm:$0x1] %v567_v1  ;;  %v213_v24 = vadd.f32 %v479_v10, %v198_v16  ;;  %v214_v25 = vadd.f32 %v479_v10, %v199_v17  ;;  %v215_v26 = vadd.f32 %v479_v10, %v200_v18 }
  0x17   : > { %240 = vst [vmem:[%s599_s19 + $0x30] sm:$0xf] %v567_v1  ;;  %241 = vst [vmem:[%s599_s19 + $0x34] sm:$0x1] %v567_v1  ;;  %v216_v27 = vadd.f32 %v479_v10, %v201_v19  ;;  %v217_v28 = vadd.f32 %v479_v10, %v202_v20  ;;  %v220_v29 = vmax.f32 %v212_v23, 0.0  ;;  %v218_v35 = vadd.f32 %v479_v10, %v203_v21 }
  0x18   : > { %242 = vst [vmem:[%s599_s19 + $0x38] sm:$0xf] %v567_v1  ;;  %243 = vst [vmem:[%s599_s19 + $0x3c] sm:$0x1] %v567_v1  ;;  %v221_v30 = vmax.f32 %v213_v24, 0.0  ;;  %v222_v31 = vmax.f32 %v214_v25, 0.0  ;;  %v219_v36 = vadd.f32 %v479_v10, %v204_v22 }
  0x19   : > { %244 = vst [vmem:[%s599_s19 + $0x40] sm:$0xf] %v567_v1  ;;  %245 = vst [vmem:[%s599_s19 + $0x44] sm:$0x1] %v567_v1  ;;  %v223_v32 = vmax.f32 %v215_v26, 0.0  ;;  %v522_v33 = vpack.c.bf16 %v220_v29, %v220_v29  ;;  %v224_v39 = vmax.f32 %v216_v27, 0.0 }
  0x1a   : > { %246 = vst [vmem:[%s599_s19 + $0x48] sm:$0xf] %v567_v1  ;;  %247 = vst [vmem:[%s599_s19 + $0x4c] sm:$0x1] %v567_v1  ;;  %v523_v34 = vpack.c.bf16 %v221_v30, %v221_v30  ;;  %v524_v37 = vpack.c.bf16 %v222_v31, %v222_v31  ;;  %v225_v40 = vmax.f32 %v217_v28, 0.0  ;;  %v226_v63 = vmax.f32 %v218_v35, 0.0 }
  0x1b   : > { %v525_v38 = vpack.c.bf16 %v223_v32, %v223_v32  ;;  %v281_v41 = vshrl.u32 %v522_v33, 16  ;;  %v284_v42 = vshll.u32 %v522_v33, 16  ;;  %v488_v45 = vld [vmem:[%s599_s19 + $0x8] sm:$0xf]  ;;  %v490_v46 = vld [vmem:[%s599_s19 + $0xc] sm:$0x1]  ;;  %v526_v57 = vpack.c.bf16 %v224_v39, %v224_v39 }
  0x1c   : > { %v289_v43 = vshrl.u32 %v523_v34, 16  ;;  %v292_v44 = vshll.u32 %v523_v34, 16  ;;  %v492_v47 = vld [vmem:[%s599_s19 + $0x10] sm:$0xf]  ;;  %v297_v48 = vshrl.u32 %v524_v37, 16  ;;  %v300_v49 = vshll.u32 %v524_v37, 16 }
  0x1d   : > { %v305_v50 = vshrl.u32 %v525_v38, 16  ;;  %v308_v51 = vshll.u32 %v525_v38, 16  ;;  %v283_v52 = vrot.slane %v281_v41, 7  ;;  %v494_v55 = vld [vmem:[%s599_s19 + $0x14] sm:$0x1]  ;;  %v527_v58 = vpack.c.bf16 %v225_v40, %v225_v40 }
  0x1e   : > { %v291_v54 = vrot.slane %v289_v43, 7  ;;  %v496_v56 = vld [vmem:[%s599_s19 + $0x18] sm:$0xf]  ;;  %v299_v60 = vrot.slane %v297_v48, 7  ;;  %v498_v61 = vld [vmem:[%s599_s19 + $0x1c] sm:$0x1]  ;;  %v528_v24 = vpack.c.bf16 %v226_v63, %v226_v63 }
  0x1f   : > { %v307_v62 = vrot.slane %v305_v50, 7  ;;  %v227_v0 = vmax.f32 %v219_v36, 0.0  ;;  %v286_v1 = vor.u32 %v284_v42, %v283_v52  ;;  %v287_v2 = vrot.slane %v283_v52, 4  ;;  %v500_v5 = vld [vmem:[%s599_s19 + $0x20] sm:$0xf] }
  0x20   : > { %v294_v3 = vor.u32 %v292_v44, %v291_v54  ;;  %v295_v4 = vrot.slane %v291_v54, 4  ;;  %v502_v6 = vld [vmem:[%s599_s19 + $0x24] sm:$0x1]  ;;  %v302_v7 = vor.u32 %v300_v49, %v299_v60  ;;  %v303_v8 = vrot.slane %v299_v60, 4  ;;  %v504_v23 = vld [vmem:[%s599_s19 + $0x28] sm:$0xf] }
  0x21   : > { %v310_v9 = vor.u32 %v308_v51, %v307_v62  ;;  %v311_v10 = vrot.slane %v307_v62, 4  ;;  %v365_v11 = vsel %vm635_vm4, %v286_v1, %v488_v45  ;;  %v371_v12 = vsel %vm643_vm5, %v287_v2, %v490_v46  ;;  %v506_v27 = vld [vmem:[%s599_s19 + $0x2c] sm:$0x1]  ;;  %v508_v29 = vld [vmem:[%s599_s19 + $0x30] sm:$0xf] }
  0x22   : > { %v374_v13 = vsel %vm635_vm4, %v294_v3, %v492_v47  ;;  %v377_v14 = vsel %vm643_vm5, %v295_v4, %v494_v55  ;;  %489 = vst [vmem:[%s599_s19 + $0x8] sm:$0xf] %v365_v11  ;;  %491 = vst [vmem:[%s599_s19 + $0xc] sm:$0x1] %v371_v12  ;;  %v380_v15 = vsel %vm635_vm4, %v302_v7, %v496_v56  ;;  %v313_v19 = vshrl.u32 %v526_v57, 16 }
  0x23   : > { %493 = vst [vmem:[%s599_s19 + $0x10] sm:$0xf] %v374_v13  ;;  %495 = vst [vmem:[%s599_s19 + $0x14] sm:$0x1] %v377_v14  ;;  %v383_v16 = vsel %vm643_vm5, %v303_v8, %v498_v61  ;;  %v386_v17 = vsel %vm635_vm4, %v310_v9, %v500_v5  ;;  %v389_v18 = vsel %vm643_vm5, %v311_v10, %v502_v6  ;;  %v316_v20 = vshll.u32 %v526_v57, 16 }
  0x24   : > { %497 = vst [vmem:[%s599_s19 + $0x18] sm:$0xf] %v380_v15  ;;  %499 = vst [vmem:[%s599_s19 + $0x1c] sm:$0x1] %v383_v16  ;;  %v321_v21 = vshrl.u32 %v527_v58, 16  ;;  %v324_v22 = vshll.u32 %v527_v58, 16  ;;  %v529_v25 = vpack.c.bf16 %v227_v0, %v227_v0 }
  0x25   : > { %501 = vst [vmem:[%s599_s19 + $0x20] sm:$0xf] %v386_v17  ;;  %503 = vst [vmem:[%s599_s19 + $0x24] sm:$0x1] %v389_v18  ;;  %v315_v26 = vrot.slane %v313_v19, 7  ;;  %v329_v31 = vshrl.u32 %v528_v24, 16 }
  0x26   : > { %v323_v28 = vrot.slane %v321_v21, 7  ;;  %v510_v30 = vld [vmem:[%s599_s19 + $0x34] sm:$0x1]  ;;  %v332_v32 = vshll.u32 %v528_v24, 16  ;;  %v337_v33 = vshrl.u32 %v529_v25, 16  ;;  %v340_v34 = vshll.u32 %v529_v25, 16 }
  0x27   : > { %v318_v35 = vor.u32 %v316_v20, %v315_v26  ;;  %v319_v36 = vrot.slane %v315_v26, 4  ;;  %v331_v39 = vrot.slane %v329_v31, 7  ;;  %v512_v40 = vld [vmem:[%s599_s19 + $0x38] sm:$0xf]  ;;  %v514_v46 = vld [vmem:[%s599_s19 + $0x3c] sm:$0x1] }
  0x28   : > { %v326_v37 = vor.u32 %v324_v22, %v323_v28  ;;  %v327_v38 = vrot.slane %v323_v28, 4  ;;  %v339_v41 = vrot.slane %v337_v33, 7  ;;  %v516_v47 = vld [vmem:[%s599_s19 + $0x40] sm:$0xf]  ;;  %v518_v48 = vld [vmem:[%s599_s19 + $0x44] sm:$0x1] }
  0x29   : > { %v392_v42 = vsel %vm635_vm4, %v318_v35, %v504_v23  ;;  %v395_v43 = vsel %vm643_vm5, %v319_v36, %v506_v27  ;;  %v334_v49 = vor.u32 %v332_v32, %v331_v39  ;;  %v335_v50 = vrot.slane %v331_v39, 4 }
  0x2a   : > { %v398_v44 = vsel %vm635_vm4, %v326_v37, %v508_v29  ;;  %v401_v45 = vsel %vm643_vm5, %v327_v38, %v510_v30  ;;  %505 = vst [vmem:[%s599_s19 + $0x28] sm:$0xf] %v392_v42  ;;  %507 = vst [vmem:[%s599_s19 + $0x2c] sm:$0x1] %v395_v43  ;;  %v342_v51 = vor.u32 %v340_v34, %v339_v41  ;;  %v343_v52 = vrot.slane %v339_v41, 4 }
  0x2b   : > { %509 = vst [vmem:[%s599_s19 + $0x30] sm:$0xf] %v398_v44  ;;  %511 = vst [vmem:[%s599_s19 + $0x34] sm:$0x1] %v401_v45  ;;  %v404_v54 = vsel %vm635_vm4, %v334_v49, %v512_v40  ;;  %v407_v55 = vsel %vm643_vm5, %v335_v50, %v514_v46 }
  0x2c   : > { %v410_v56 = vsel %vm635_vm4, %v342_v51, %v516_v47  ;;  %v413_v57 = vsel %vm643_vm5, %v343_v52, %v518_v48  ;;  %513 = vst [vmem:[%s599_s19 + $0x38] sm:$0xf] %v404_v54  ;;  %515 = vst [vmem:[%s599_s19 + $0x3c] sm:$0x1] %v407_v55 }
  0x2d   : > { %517 = vst [vmem:[%s599_s19 + $0x40] sm:$0xf] %v410_v56  ;;  %519 = vst [vmem:[%s599_s19 + $0x44] sm:$0x1] %v413_v57 }
  0x2e PF: > { %s13_s12 = sadd.s32 1, %s565_s12  }
  0x2f   : > { %p10_p5 = scmp.ge.s32.totalorder %s13_s12, 4  }
  0x31   :  { %12 = sbr.rel (!%p10_p5) target bundleno = 1 (0x1), region = 63 }

// kernel: resblock_conv1x_forward.4
= control target key start
LH: loop header
LB: loop body
LE: loop exit
PB: predicated region body
PF: predicated region fallthrough
CT: control target
= control target key end

     0   :  { %s2490_s27 = smov 0   ;;  %s2919_s0 = inlined_call_operand.vmem [shape: bf16[2,9,9,4], index: 0, kind: input, shape index: {}]   ;;  %s2920_s1 = inlined_call_operand.vmem [shape: bf16[2,9,9,4], index: 1, kind: input, shape index: {}]   ;;  %s2921_s2 = inlined_call_operand.vmem [shape: bf16[2,9,9,4], index: 2, kind: input, shape index: {}]   ;;  %s2922_s3 = inlined_call_operand.vmem [shape: bf16[2,9,9,4], index: 3, kind: input, shape index: {}]   ;;  %s2923_s4 = inlined_call_operand.vmem [shape: bf16[9,4,128], index: 4, kind: input, shape index: {}]   ;;  %s2924_s5 = inlined_call_operand.vmem [shape: bf16[4,128], index: 5, kind: input, shape index: {}]   ;;  %s2925_s6 = inlined_call_operand.vmem [shape: bf16[128,128], index: 6, kind: output, shape index: {0}]   ;;  %s2926_s7 = inlined_call_operand.vmem [shape: bf16[128,128], index: 7, kind: output, shape index: {1}]   ;;  %s2927_s8 = inlined_call_operand.vmem [shape: f32[2,2,256], index: 8, kind: output, shape index: {2}]  }
   0x1 LB: > { %s2496_s28 = sadd.s32 4294967295, %s2443_s27   ;;  %p2003_p0 = scmp.ge.s32.totalorder %s2443_s27, 1  ;;  %s2443_s27 = sphi %s2490_s27, %s19_s27  }
   0x2   : > { %p297_p1 = scmp.lt.s32.totalorder %s2443_s27, 3 }
   0x4   : > { %p298_p2 = pnand %p2003_p0, %p297_p1 }
   0x5   : > { %vm481_vm0 = vcmask (!%p298_p2), 1041408   ;;  %v2049_v0 = vld [vmem:[%s2923_s4 + $0x8] sm:$0x3] (!%p298_p2)  ;;  %v2014_v1 = vld [vmem:[%s2923_s4 + $0x2] sm:$0x3] (!%p298_p2)  ;;  %p356_p3 = scmp.lt.s32.totalorder (!%p298_p2), %s2496_s28, 1 }
   0x6   : > { %301 = sbr.rel (%p298_p2) target bundleno = 346 (0x15a), region = 44  ;;  %2398 = vmatprep.subr.msk.bf16.mxu0 (!%p298_p2), %vm481_vm0, %v2049_v0  ;;  %2394 = vmatprep.subr.msk.bf16.mxu1 (!%p298_p2), %vm481_vm0, %v2014_v1  ;;  %v1012_v2 = vsel (!%p298_p2), %vm481_vm0, %v2049_v0, 0  ;;  %v483_v3 = vsel (!%p298_p2), %vm481_vm0, %v2014_v1, 0  ;;  %v2058_v4 = vld [vmem:[%s2923_s4 + $0xa] sm:$0x3] (!%p298_p2)  ;;  %vm468_vm1 = vcmask (!%p298_p2), 31744  }
   0x7   : > { %2271 = vmatpush3.bf16.msra.mxu0 (!%p298_p2), %v1012_v2  ;;  %2231 = vmatpush3.bf16.msra.mxu1 (!%p298_p2), %v483_v3  ;;  %v445_v5 = vld [vmem:[%s2923_s4] sm:$0x3] (!%p298_p2)  ;;  %v1226_v6 = vsel (!%p298_p2), %vm481_vm0, %v2058_v4, 0  ;;  %v2067_v14 = vld [vmem:[%s2923_s4 + $0xc] sm:$0x3] (!%p298_p2)  ;;  %vm1825_vm5 = vcmask (!%p298_p2), 1040384  }
   0x8   : > { %2399 = vmatprep.subr.msk.bf16.mxu0 (!%p298_p2), %vm481_vm0, %v2058_v4  ;;  %2395 = vmatprep.subr.msk.bf16.mxu1 (!%p298_p2), %vm481_vm0, %v445_v5  ;;  %v583_v7 = vsel (!%p298_p2), %vm481_vm0, %v445_v5, 0  ;;  %v2031_v15 = vld [vmem:[%s2923_s4 + $0x4] sm:$0x3] (!%p298_p2)  ;;  %vm650_vm2 = vsmask.f32 (!%p298_p2), 3328  ;;  %v2596_v26 = vsel (!%p298_p2), %vm481_vm0, %v2067_v14, 0 }
   0x9   : > { %vm651_vm3 = vsmask.f32 (!%p298_p2), 7440  ;;  %v2571_v20 = vld [vmem:[%s2923_s4 + $0x6] sm:$0x3] (!%p298_p2)  ;;  %v2599_v27 = vsel (!%p298_p2), %vm481_vm0, %v2031_v15, 0 }
   0xa   : > { %v2623_v38 = vsel (!%p298_p2), %vm481_vm0, %v2571_v20, 0  ;;  %vm2659_vm4 = vmor (!%p298_p2), %vm650_vm2, %vm651_vm3 }
   0xd   : > { %s2515_s13 = scalar_select %p356_p3, %s2496_s28, 1 }
   0xf   : > { %s2404_s16 = smul.u32 72, %s2515_s13 }
  0x11   : > { %s2526_s19 = scalar_lea.vmem %s2920_s1, %s2404_s16  ;;  %s375_s22 = scalar_lea.vmem %s2922_s3, %s2404_s16 }
  0x12   : > { %v412_v8 = vld [vmem:[%s2526_s19] sm:$0xf]  ;;  %v2532_v9 = vld [vmem:[%s2526_s19 + $0x8] sm:$0xf]  ;;  %v2535_v10 = vld [vmem:[%s2526_s19 + $0x10] sm:$0xf]  ;;  %s2560_s9 = scalar_lea.vmem %s2919_s0, %s2404_s16  ;;  %s2576_s15 = scalar_lea.vmem %s2921_s2, %s2404_s16 }
  0x13   : > { %v2541_v11 = vld [vmem:[%s2526_s19 + $0x18] sm:$0xf]  ;;  %v2544_v12 = vld [vmem:[%s2526_s19 + $0x20] sm:$0xf]  ;;  %v2015_v13 = vcombine.low %v412_v8, %v2532_v9  ;;  %v2566_v19 = vld [vmem:[%s2526_s19 + $0x28] sm:$0xf] }
  0x14   : > { %v2016_v16 = vcombine.low %v2535_v10, %v2541_v11  ;;  %v2555_v17 = vld [vmem:[%s375_s22] ss:$8 sps:$4 sm:$0xff]   ;;  %v2563_v18 = vld [vmem:[%s375_s22 + $0x10] ss:$8 sps:$4 sm:$0xff]   ;;  %v2017_v21 = vcombine.low %v2544_v12, %v2566_v19  ;;  %v422_v36 = vld [vmem:[%s2576_s15 + $0x4] sm:$0x1] }
  0x15   : > { %2232 = vmatprep.mubr.msk.bf16.mxu1 %vm468_vm1, %v2015_v13  ;;  %2272 = vmatprep.mubr.msk.bf16.mxu0 %vm468_vm1, %v2555_v17  ;;  %v2583_v22 = vld [vmem:[%s375_s22 + $0x20] ss:$8 sps:$4 sm:$0xff]   ;;  %v2588_v23 = vld [vmem:[%s2526_s19 + $0x30] sm:$0xf]  ;;  %v2591_v24 = vld [vmem:[%s2526_s19 + $0x38] sm:$0xf] }
  0x16   : > { %2233 = vmatmul.mubr.msk.bf16.vlgmr.msra.gmra.mrb[0].mxu1 %vm468_vm1, %v2016_v16  ;;  %2273 = vmatmul.mubr.msk.bf16.vlgmr.msra.gmra.mrb[0].mxu0 %vm468_vm1, %v2563_v18  ;;  %v394_v25 = vld [vmem:[%s2560_s9] sm:$0xf]  ;;  %v2603_v28 = vld [vmem:[%s375_s22 + $0x30] ss:$8 sps:$4 sm:$0xff]   ;;  %v2606_v29 = vld [vmem:[%s2560_s9 + $0x8] sm:$0xf]  ;;  %v2018_v33 = vcombine.low %v2588_v23, %v2591_v24  ;;  %v2079_v1 = vcombine.low %v2566_v19, %v2588_v23 }
  0x17   : > { %2241 = vmatpush3.bf16.msra.mxu1 %v583_v7  ;;  %2281 = vmatpush3.bf16.msra.mxu0 %v1226_v6  ;;  %v654_v30 = vshrl.u32 %v394_v25, 16  ;;  %v657_v31 = vshll.u32 %v394_v25, 16  ;;  %v2609_v32 = vld [vmem:[%s2576_s15] sm:$0xf]  ;;  %v2023_v34 = vcombine.low %v394_v25, %v2606_v29  ;;  %v668_v35 = vshrl.u32 %v2606_v29, 16 }
  0x18   : > { %2236 = vmatprep.mubr.msk.bf16.mxu1 %vm468_vm1, %v2017_v21  ;;  %2276 = vmatprep.mubr.msk.bf16.mxu0 %vm468_vm1, %v2583_v22  ;;  %v2618_v37 = vld [vmem:[%s2576_s15 + $0x8] sm:$0xf]  ;;  %v671_v40 = vshll.u32 %v2606_v29, 16  ;;  %v424_v41 = vld [vmem:[%s2576_s15 + $0xc] sm:$0x1]  ;;  %v1088_v42 = vshrl.u32 %v2609_v32, 16 }
  0x19   : > { %2400 = vmatprep.subr.msk.bf16.mxu0 %vm481_vm0, %v2067_v14  ;;  %2396 = vmatprep.subr.msk.bf16.mxu1 %vm481_vm0, %v2031_v15  ;;  %v2625_v39 = vrot.slane %v654_v30, 4  ;;  %v1091_v43 = vshll.u32 %v2609_v32, 16  ;;  %v1097_v44 = vshll.u32 %v422_v36, 16  ;;  %v1102_v45 = vshrl.u32 %v2618_v37, 16  ;;  %v2634_v48 = vld [vmem:[%s2560_s9 + $0x10] sm:$0xf] }
  0x1a   : > { %v1105_v46 = vshll.u32 %v2618_v37, 16  ;;  %v1111_v47 = vshll.u32 %v424_v41, 16  ;;  %v2636_v49 = vrot.slane %v657_v31, 5  ;;  %v1090_v50 = vrot.slane %v1088_v42, 4  ;;  %v2639_v52 = vld [vmem:[%s2560_s9 + $0x18] sm:$0xf] }
  0x1b   : > { %v1093_v51 = vrot.slane %v1091_v43, 5  ;;  %v682_v53 = vshrl.u32 %v2634_v48, 16  ;;  %v1099_v54 = vrot.slane %v1097_v44, 5  ;;  %v1104_v55 = vrot.slane %v1102_v45, 4  ;;  %v2645_v58 = vld [vmem:[%s2576_s15 + $0x10] sm:$0xf] }
  0x1c   : > { %v1107_v56 = vrot.slane %v1105_v46, 5  ;;  %v685_v57 = vshll.u32 %v2634_v48, 16  ;;  %v1113_v60 = vrot.slane %v1111_v47, 5  ;;  %v2024_v61 = vcombine.low %v2634_v48, %v2639_v52  ;;  %v426_v63 = vld [vmem:[%s2576_s15 + $0x14] sm:$0x1] }
  0x1d   : > { %v1094_v59 = vor.u32 %v1093_v51, %v1090_v50  ;;  %v696_v62 = vshrl.u32 %v2639_v52, 16  ;;  %v2655_v0 = vld [vmem:[%s2576_s15 + $0x18] sm:$0xf]  ;;  %v428_v3 = vld [vmem:[%s2576_s15 + $0x1c] sm:$0x1]  ;;  %v1116_v4 = vshrl.u32 %v2645_v58, 16 }
  0x1e   : > { %2237 = vmatmul.mubr.msk.bf16.gmra.mrb[4].mxu1 %vm468_vm1, %v2018_v33  ;;  %2277 = vmatmul.mubr.msk.bf16.gmra.mrb[4].mxu0 %vm468_vm1, %v2603_v28  ;;  %v1108_v2 = vor.u32 %v1107_v56, %v1104_v55  ;;  %v1119_v5 = vshll.u32 %v2645_v58, 16  ;;  %v1125_v6 = vshll.u32 %v426_v63, 16  ;;  %v1130_v8 = vshrl.u32 %v2655_v0, 16  ;;  %v2669_v15 = vld [vmem:[%s2560_s9 + $0x20] sm:$0xf] }
  0x1f   : > { %2242 = vmatprep.mubr.msk.bf16.mxu1 %vm468_vm1, %v2023_v34  ;;  %v1095_v7 = vrot.slane %v1094_v59, 4  ;;  %v1133_v13 = vshll.u32 %v2655_v0, 16  ;;  %v1139_v14 = vshll.u32 %v428_v3, 16  ;;  %v699_v21 = vshll.u32 %v2639_v52, 16  ;;  %v2673_v31 = vld [vmem:[%s2560_s9 + $0x28] sm:$0xf] }
  0x20   : > { %v1109_v16 = vrot.slane %v1108_v2, 4  ;;  %v1118_v25 = vrot.slane %v1116_v4, 4  ;;  %v1121_v30 = vrot.slane %v1119_v5, 5  ;;  %v1127_v34 = vrot.slane %v1125_v6, 5  ;;  %v2678_v42 = vld [vmem:[%s2576_s15 + $0x20] sm:$0xf] }
  0x21   : > { %v1100_v33 = vsel %vm2659_vm4, %v1095_v7, %v1099_v54  ;;  %v1132_v36 = vrot.slane %v1130_v8, 4  ;;  %v1135_v41 = vrot.slane %v1133_v13, 5  ;;  %v1141_v45 = vrot.slane %v1139_v14, 5  ;;  %v430_v47 = vld [vmem:[%s2576_s15 + $0x24] sm:$0x1] }
  0x22   : > { %v1114_v43 = vsel %vm2659_vm4, %v1109_v16, %v1113_v60  ;;  %v1122_v44 = vor.u32 %v1121_v30, %v1118_v25  ;;  %v2025_v46 = vcombine.low %v2669_v15, %v2673_v31  ;;  %v2686_v50 = vld [vmem:[%s2576_s15 + $0x28] sm:$0xf]  ;;  %v710_v54 = vshrl.u32 %v2669_v15, 16  ;;  %v432_v59 = vld [vmem:[%s2576_s15 + $0x2c] sm:$0x1] }
  0x23   : > { %v2059_v51 = vcombine.low %v1100_v33, %v1114_v43  ;;  %v1136_v55 = vor.u32 %v1135_v41, %v1132_v36  ;;  %v713_v56 = vshll.u32 %v2669_v15, 16  ;;  %v724_v63 = vshrl.u32 %v2673_v31, 16  ;;  %v2696_v4 = vld [vmem:[%s2560_s9 + $0x30] sm:$0xf]  ;;  %v2703_v8 = vld [vmem:[%s2560_s9 + $0x38] sm:$0xf] }
  0x24   : > { %v1123_v60 = vrot.slane %v1122_v44, 4  ;;  %v727_v2 = vshll.u32 %v2673_v31, 16  ;;  %v1144_v3 = vshrl.u32 %v2678_v42, 16  ;;  %v1147_v6 = vshll.u32 %v2678_v42, 16  ;;  %v2716_v36 = vld [vmem:[%s2576_s15 + $0x30] sm:$0xf] }
  0x25   : > { %2282 = vmatprep.mubr.msk.bf16.mxu0 %vm468_vm1, %v2059_v51  ;;  %v1137_v5 = vrot.slane %v1136_v55, 4  ;;  %v1153_v7 = vshll.u32 %v430_v47, 16  ;;  %v1161_v16 = vshll.u32 %v2686_v50, 16  ;;  %v1167_v25 = vshll.u32 %v432_v59, 16  ;;  %v2721_v41 = vld [vmem:[%s2923_s4 + $0xe] sm:$0x3] }
  0x26   : > { %2243 = vmatmul.mubr.msk.bf16.vlgmr.msra.gmra.mrb[0].mxu1 %vm468_vm1, %v2024_v61  ;;  %v1158_v61 = vshrl.u32 %v2686_v50, 16  ;;  %v1128_v13 = vsel %vm2659_vm4, %v1123_v60, %v1127_v34  ;;  %v1146_v14 = vrot.slane %v1144_v3, 4  ;;  %v1149_v33 = vrot.slane %v1147_v6, 5  ;;  %v2727_v47 = vld [vmem:[%s2576_s15 + $0x38] sm:$0xf] }
  0x27   : > { %2251 = vmatpush3.bf16.msra.mxu1 %v2599_v27  ;;  %2246 = vmatprep.mubr.msk.bf16.mxu1 %vm468_vm1, %v2025_v46  ;;  %v1142_v27 = vsel %vm2659_vm4, %v1137_v5, %v1141_v45  ;;  %v1155_v44 = vrot.slane %v1153_v7, 5  ;;  %v1163_v46 = vrot.slane %v1161_v16, 5  ;;  %v434_v45 = vld [vmem:[%s2576_s15 + $0x34] sm:$0x1]  ;;  %v1169_v55 = vrot.slane %v1167_v25, 5 }
  0x28   : > { %2397 = vmatprep.subr.msk.bf16.mxu1 %vm481_vm0, %v2571_v20  ;;  %v1160_v34 = vrot.slane %v1158_v61, 4  ;;  %v2060_v43 = vcombine.low %v1128_v13, %v1142_v27  ;;  %v2026_v20 = vcombine.low %v2696_v4, %v2703_v8  ;;  %v1150_v51 = vor.u32 %v1149_v33, %v1146_v14  ;;  %v436_v3 = vld [vmem:[%s2576_s15 + $0x3c] sm:$0x1]  ;;  %v397_v6 = vld [vmem:[%s2560_s9 + $0xc] sm:$0x1] }
  0x29   : > { %v1172_v7 = vshrl.u32 %v2716_v36, 16  ;;  %v1175_v61 = vshll.u32 %v2716_v36, 16  ;;  %v1181_v14 = vshll.u32 %v434_v45, 16  ;;  %v1186_v16 = vshrl.u32 %v2727_v47, 16 }
  0x2a   : > { %2283 = vmatmul.mubr.msk.bf16.vlgmr.msra.gmra.mrb[0].mxu0 %vm468_vm1, %v2060_v43  ;;  %v1164_v5 = vor.u32 %v1163_v46, %v1160_v34  ;;  %v1151_v13 = vrot.slane %v1150_v51, 4  ;;  %v1189_v25 = vshll.u32 %v2727_v47, 16  ;;  %v1195_v43 = vshll.u32 %v436_v3, 16  ;;  %v395_v46 = vld [vmem:[%s2560_s9 + $0x4] sm:$0x1] }
  0x2b   : > { %2291 = vmatpush3.bf16.msra.mxu0 %v2596_v26  ;;  %v1174_v33 = vrot.slane %v1172_v7, 4  ;;  %v1177_v34 = vrot.slane %v1175_v61, 5  ;;  %v1183_v30 = vrot.slane %v1181_v14, 5  ;;  %v1188_v45 = vrot.slane %v1186_v16, 4 }
  0x2c   : > { %v1165_v27 = vrot.slane %v1164_v5, 4  ;;  %2401 = vmatprep.subr.msk.bf16.mxu0 %vm481_vm0, %v2721_v41  ;;  %v1156_v26 = vsel %vm2659_vm4, %v1151_v13, %v1155_v44  ;;  %v1191_v51 = vrot.slane %v1189_v25, 5  ;;  %v660_v3 = vor.u32 %v2636_v49, %v2625_v39 }
  0x2d   : > { %v1178_v60 = vor.u32 %v1177_v34, %v1174_v33  ;;  %v663_v59 = vshll.u32 %v395_v46, 16  ;;  %v670_v44 = vrot.slane %v668_v35, 4  ;;  %v673_v16 = vrot.slane %v671_v40, 5  ;;  %v403_v46 = vld [vmem:[%s2560_s9 + $0x24] sm:$0x1] }
  0x2e   : > { %2247 = vmatmul.mubr.msk.bf16.gmra.mrb[4].mxu1 %vm468_vm1, %v2026_v20  ;;  %v1170_v5 = vsel %vm2659_vm4, %v1165_v27, %v1169_v55  ;;  %v1197_v20 = vrot.slane %v1195_v43, 5  ;;  %v1192_v61 = vor.u32 %v1191_v51, %v1188_v45  ;;  %v661_v14 = vrot.slane %v660_v3, 4  ;;  %v399_v55 = vld [vmem:[%s2560_s9 + $0x14] sm:$0x1]  ;;  %v401_v43 = vld [vmem:[%s2560_s9 + $0x1c] sm:$0x1] }
  0x2f   : > { %v2061_v7 = vcombine.low %v1156_v26, %v1170_v5  ;;  %v1179_v13 = vrot.slane %v1178_v60, 4  ;;  %v677_v25 = vshll.u32 %v397_v6, 16  ;;  %v665_v33 = vrot.slane %v663_v59, 5 }
  0x30   : > { %v1193_v27 = vrot.slane %v1192_v61, 4  ;;  %v2068_v39 = vcombine.low %v2606_v29, %v2634_v48  ;;  %v684_v49 = vrot.slane %v682_v53, 4  ;;  %v674_v60 = vor.u32 %v673_v16, %v670_v44  ;;  %v405_v61 = vld [vmem:[%s2560_s9 + $0x2c] sm:$0x1] }
  0x31   : > { %2286 = vmatprep.mubr.msk.bf16.mxu0 %vm468_vm1, %v2061_v7  ;;  %v1184_v35 = vsel %vm2659_vm4, %v1179_v13, %v1183_v30  ;;  %v679_v34 = vrot.slane %v677_v25, 5  ;;  %v687_v40 = vrot.slane %v685_v57, 5  ;;  %v666_v59 = vsel %vm2659_vm4, %v661_v14, %v665_v33  ;;  %v407_v14 = vld [vmem:[%s2560_s9 + $0x34] sm:$0x1] }
  0x32   : > { %v1198_v6 = vsel %vm2659_vm4, %v1193_v27, %v1197_v20  ;;  %v691_v29 = vshll.u32 %v399_v55, 16  ;;  %v698_v53 = vrot.slane %v696_v62, 4  ;;  %v675_v30 = vrot.slane %v674_v60, 4 }
  0x33   : > { %v2062_v26 = vcombine.low %v1184_v35, %v1198_v6  ;;  %v688_v45 = vor.u32 %v687_v40, %v684_v49  ;;  %v701_v51 = vrot.slane %v699_v21, 5  ;;  %v705_v57 = vshll.u32 %v401_v43, 16  ;;  %v409_v43 = vld [vmem:[%s2560_s9 + $0x3c] sm:$0x1] }
  0x34   : > { %v693_v48 = vrot.slane %v691_v29, 5  ;;  %v712_v5 = vrot.slane %v710_v54, 4  ;;  %v715_v20 = vrot.slane %v713_v56, 5  ;;  %v2781_v62 = vsel %vm2659_vm4, %v675_v30, %v679_v34 }
  0x35   : > { %2287 = vmatmul.mubr.msk.bf16.gmra.mrb[4].mxu0 %vm468_vm1, %v2062_v26  ;;  %v689_v3 = vrot.slane %v688_v45, 4  ;;  %v702_v7 = vor.u32 %v701_v51, %v698_v53  ;;  %v719_v44 = vshll.u32 %v403_v46, 16  ;;  %v2032_v21 = vcombine.low %v666_v59, %v2781_v62 }
  0x36   : > { %2292 = vmatprep.mubr.msk.bf16.mxu0 %vm468_vm1, %v2068_v39  ;;  %v707_v13 = vrot.slane %v705_v57, 5  ;;  %v716_v54 = vor.u32 %v715_v20, %v712_v5  ;;  %v726_v56 = vrot.slane %v724_v63, 4  ;;  %v729_v27 = vrot.slane %v727_v2, 5  ;;  %v410_v57 = vld [vmem:[%s2560_s9 + $0x40] sm:$0xf] }
  0x37   : > { %v2791_v16 = vsel %vm2659_vm4, %v689_v3, %v693_v48  ;;  %v703_v25 = vrot.slane %v702_v7, 4  ;;  %v721_v55 = vrot.slane %v719_v44, 5  ;;  %v755_v33 = vshll.u32 %v2703_v8, 16  ;;  %2252 = vmatprep.mubr.msk.bf16.mxu1 %vm468_vm1, %v2032_v21  ;;  %v2085_v5 = vld [vmem:[%s2923_s4 + $0x10] sm:$0x3] }
  0x38   : > { %v717_v39 = vrot.slane %v716_v54, 4  ;;  %v733_v49 = vshll.u32 %v405_v61, 16  ;;  %v2930_v35 = vshrl.u32 %v2696_v4, 16  ;;  %v730_v34 = vor.u32 %v729_v27, %v726_v56 }
  0x39   : > { %v2801_v60 = vsel %vm2659_vm4, %v703_v25, %v707_v13  ;;  %v2931_v40 = vshll.u32 %v2696_v4, 16  ;;  %v747_v2 = vshll.u32 %v407_v14, 16  ;;  %v2070_v53 = vcombine.low %v2673_v31, %v2696_v4  ;;  %v411_v25 = vld [vmem:[%s2560_s9 + $0x44] sm:$0x1]  ;;  %s2117_s9 = sshll.u32 %s2515_s13, 2 }
  0x3a   : > { %v740_v63 = vrot.slane %v2930_v35, 4  ;;  %v2033_v59 = vcombine.low %v2791_v16, %v2801_v60  ;;  %v735_v29 = vrot.slane %v733_v49, 5  ;;  %v2932_v46 = vshrl.u32 %v2703_v8, 16  ;;  %s392_s12 = scalar_lea.vmem %s2927_s8, %s2117_s9 }
  0x3b   : > { %v743_v6 = vrot.slane %v2931_v40, 5  ;;  %v1418_v30 = vsel %vm481_vm0, %v2721_v41, 0  ;;  %v2816_v45 = vsel %vm2659_vm4, %v717_v39, %v721_v55  ;;  %v731_v51 = vrot.slane %v730_v34, 4  ;;  %v1602_v41 = vld [vmem:[%s2924_s5] sm:$0x3] }
  0x3c   : > { %v754_v26 = vrot.slane %v2932_v46, 4  ;;  %2253 = vmatmul.mubr.msk.bf16.vlgmr.msra.gmra.mrb[0].mxu1 %vm468_vm1, %v2033_v59  ;;  %v749_v31 = vrot.slane %v747_v2, 5  ;;  %v757_v4 = vrot.slane %v755_v33, 5  ;;  %v761_v20 = vshll.u32 %v409_v43, 16 }
  0x3d   : > { %v744_v48 = vor.u32 %v743_v6, %v740_v63  ;;  %v1494_v3 = vshrl.u32 %v410_v57, 16  ;;  %v2933_v7 = vcombine.low %v2639_v52, %v2669_v15  ;;  %2261 = vmatpush3.bf16.msra.mxu1 %v2623_v38  ;;  %v736_v61 = vsel %vm2659_vm4, %v731_v51, %v735_v29 }
  0x3e   : > { %v1497_v21 = vshll.u32 %v410_v57, 16  ;;  %v2034_v13 = vcombine.low %v2816_v45, %v736_v61  ;;  %v758_v54 = vor.u32 %v757_v4, %v754_v26  ;;  %v763_v56 = vrot.slane %v761_v20, 5  ;;  %2403 = vmatprep.subr.msk.bf16.mxu1 %vm481_vm0, %v1602_v41 }
  0x3f   : > { %2293 = vmatmul.mubr.msk.bf16.vlgmr.msra.gmra.mrb[0].mxu0 %vm468_vm1, %v2933_v7  ;;  %v745_v44 = vrot.slane %v744_v48, 4  ;;  %v1496_v14 = vrot.slane %v1494_v3, 4  ;;  %v2071_v15 = vcombine.low %v2703_v8, %v410_v57  ;;  %v1503_v33 = vshll.u32 %v411_v25, 16 }
  0x40   : > { %2301 = vmatpush3.bf16.msra.mxu0 %v1418_v30  ;;  %2296 = vmatprep.mubr.msk.bf16.mxu0 %vm468_vm1, %v2070_v53  ;;  %v1499_v55 = vrot.slane %v1497_v21, 5  ;;  %v759_v52 = vrot.slane %v758_v54, 4  ;;  %v2077_v39 = vcombine.low %v2532_v9, %v2535_v10  ;;  %v2041_v35 = vcombine.low %v2609_v32, %v2618_v37 }
  0x41   : > { %2402 = vmatprep.subr.msk.bf16.mxu0 %vm481_vm0, %v2085_v5  ;;  %2256 = vmatprep.mubr.msk.bf16.mxu1 %vm468_vm1, %v2034_v13  ;;  %v750_v38 = vsel %vm2659_vm4, %v745_v44, %v749_v31  ;;  %v1505_v43 = vrot.slane %v1503_v33, 5  ;;  %v2078_v9 = vcombine.low %v2541_v11, %v2544_v12  ;;  %v2042_v10 = vcombine.low %v2645_v58, %v2655_v0  ;;  %v420_v11 = vld [vmem:[%s2526_s19 + $0x40] sm:$0xf]  ;;  %s2008_s19 = sshll.u32 %s2496_s28, 3 }
  0x42   : > { %v1500_v27 = vor.u32 %v1499_v55, %v1496_v14  ;;  %v764_v49 = vsel %vm2659_vm4, %v759_v52, %v763_v56  ;;  %v1527_v32 = vsel %vm481_vm0, %v2085_v5, 0  ;;  %v1604_v37 = vsel %vm481_vm0, %v1602_v41, 0  ;;  %p377_p4 = scmp.lt.s32.totalorder %s2008_s19, 15 }
  0x43   : > { %v2035_v63 = vcombine.low %v750_v38, %v764_v49  ;;  %v2043_v40 = vcombine.low %v2678_v42, %v2686_v50  ;;  %v2044_v12 = vcombine.low %v2716_v36, %v2727_v47  ;;  %v2080_v58 = vcombine.low %v2591_v24, %v420_v11 }
  0x44   : > { %v1501_v34 = vrot.slane %v1500_v27, 4  ;;  %v2086_v0 = vcombine.low %v2781_v62, %v2791_v16  ;;  %v2087_v19 = vcombine.low %v2801_v60, %v2816_v45  ;;  %v2088_v23 = vcombine.low %v736_v61, %v750_v38  ;;  %s2935_s19 = smov (!%p377_p4, %s2008_s19), 15 }
  0x45   : > { %2257 = vmatmul.mubr.msk.bf16.gmra.mrb[4].mxu1 %vm468_vm1, %v2035_v63  ;;  %s2009_s23 = sshll.u32 %s2935_s19, 2 }
  0x46   : > { %v1506_v8 = vsel %vm2659_vm4, %v1501_v34, %v1505_v43  ;;  %2262 = vmatprep.mubr.msk.bf16.mxu1 %vm468_vm1, %v2041_v35  ;;  %s2896_s26 = scalar_lea.vmem %s2926_s7, %s2009_s23  ;;  %s2901_s30 = scalar_lea.vmem %s2925_s6, %s2009_s23 }
  0x47   : > { %2297 = vmatmul.mubr.msk.bf16.gmra.mrb[4].mxu0 %vm468_vm1, %v2071_v15  ;;  %v2089_v24 = vcombine.low %v764_v49, %v1506_v8 }
  0x48   : > { %2302 = vmatprep.mubr.msk.bf16.mxu0 %vm468_vm1, %v2077_v39 }
  0x4d   : > { %2263 = vmatmul.mubr.msk.bf16.vlgmr.msra.gmra.mrb[0].mxu1 %vm468_vm1, %v2042_v10 }
  0x4e   : > { %2321 = vmatpush3.bf16.msra.mxu1 %v1604_v37  ;;  %2266 = vmatprep.mubr.msk.bf16.mxu1 %vm468_vm1, %v2043_v40 }
  0x4f   : > { %2303 = vmatmul.mubr.msk.bf16.vlgmr.msra.gmra.mrb[0].mxu0 %vm468_vm1, %v2078_v9 }
  0x50   : > { %2311 = vmatpush3.bf16.msra.mxu0 %v1527_v32  ;;  %2306 = vmatprep.mubr.msk.bf16.mxu0 %vm468_vm1, %v2079_v1 }
  0x55   : > { %2267 = vmatmul.mubr.msk.bf16.gmra.mrb[4].mxu1 %vm468_vm1, %v2044_v12 }
  0x56   : > { %2322 = vmatprep.mubr.msk.bf16.mxu1 %vm468_vm1, %v2555_v17 }
  0x57   : > { %2307 = vmatmul.mubr.msk.bf16.gmra.mrb[4].mxu0 %vm468_vm1, %v2080_v58 }
  0x58   : > { %2312 = vmatprep.mubr.msk.bf16.mxu0 %vm468_vm1, %v2086_v0 }
  0x5d   : > { %2323 = vmatmul.mubr.msk.bf16.vlgmr.msra.gmra.mrb[8].mxu1 %vm468_vm1, %v2563_v18 }
  0x5e   : > { %2326 = vmatprep.mubr.msk.bf16.mxu1 %vm468_vm1, %v2583_v22 }
  0x5f   : > { %2313 = vmatmul.mubr.msk.bf16.vlgmr.msra.gmra.mrb[0].mxu0 %vm468_vm1, %v2087_v19 }
  0x60   : > { %2316 = vmatprep.mubr.msk.bf16.mxu0 %vm468_vm1, %v2088_v23 }
  0x65   : > { %2327 = vmatmul.mubr.msk.bf16.gmra.mrb[12].mxu1 %vm468_vm1, %v2603_v28 }
  0x67   : > { %2317 = vmatmul.mubr.msk.bf16.gmra.mrb[4].mxu0 %vm468_vm1, %v2089_v24 }
 0x120   : > { %v2264_v17 = vpop.f32.mrb[0].mxu1 }
 0x121   : > { %v938_v42 = vpop.f32.mrb[1].mxu1 }
 0x122   : > { %v2265_v50 = vpop.f32.mrb[2].mxu1 }
 0x123   : > { %v941_v36 = vpop.f32.mrb[3].mxu1 }
 0x128   : > { %v2268_v47 = vpop.f32.mrb[4].mxu1 }
 0x129   : > { %v954_v62 = vpop.f32.mrb[5].mxu1 }
 0x12a   : > { %v2269_v18 = vpop.f32.mrb[6].mxu1 }
 0x12b   : > { %v2891_v16 = vpop.f32.mrb[7].mxu1 }
 0x130   : > { %v2324_v60 = vpop.f32.mrb[8].mxu1 }
 0x131   : > { %v1640_v59 = vpop.f32.mrb[9].mxu1  ;;  %v1800_v44 = vmul.f32 %v2324_v60, %v2324_v60 }
 0x132   : > { %v2314_v22 = vpop.f32.mrb[0].mxu0  ;;  %v2325_v53 = vpop.f32.mrb[10].mxu1  ;;  %v1798_v31 = vmul.f32 %v1640_v59, %v1640_v59 }
 0x133   : > { %v2330_v6 = vadd.f32 %v2314_v22, %v2264_v17  ;;  %v1563_v2 = vpop.f32.mrb[1].mxu0  ;;  %v2162_v26 = vpack.c.bf16 %v2325_v53, %v2324_v60  ;;  %v1643_v45 = vpop.f32.mrb[11].mxu1  ;;  %v1801_v52 = vmul.f32 %v2325_v53, %v2325_v53 }
 0x134   : > { %v2331_v29 = vadd.f32 %v1563_v2, %v938_v42  ;;  %v2315_v28 = vpop.f32.mrb[2].mxu0  ;;  %v2157_v48 = vpack.c.bf16 %v1643_v45, %v1640_v59  ;;  %v1764_v57 = vadd.f32 %v1643_v45, %v1640_v59  ;;  %v1799_v20 = vmul.f32 %v1643_v45, %v1643_v45 }
 0x135   : > { %v2332_v46 = vadd.f32 %v2315_v28, %v2265_v50  ;;  %v1566_v30 = vpop.f32.mrb[3].mxu0  ;;  %2177 = vst [vmem:[%s2896_s26 + $0x8] sm:$0xff] %v2162_v26   ;;  %v1779_v13 = vmul.f32 %v2330_v6, %v2330_v6 }
 0x136   : > { %v2333_v51 = vadd.f32 %v1566_v30, %v941_v36  ;;  %v1777_v5 = vmul.f32 %v2331_v29, %v2331_v29  ;;  %2158 = vst [vmem:[%s2896_s26] sm:$0xff] %v2157_v48   ;;  %v1765_v61 = vadd.f32 %v2324_v60, %v1764_v57  ;;  %v1806_v21 = vadd.f32 %v1799_v20, %v1798_v31 }
 0x137   : > { %v2142_v4 = vpack.c.bf16 %v2332_v46, %v2330_v6  ;;  %v1780_v38 = vmul.f32 %v2332_v46, %v2332_v46 }
 0x138   : > { %v2137_v3 = vpack.c.bf16 %v2333_v51, %v2331_v29  ;;  %v1751_v41 = vadd.f32 %v2333_v51, %v2331_v29  ;;  %v1778_v7 = vmul.f32 %v2333_v51, %v2333_v51  ;;  %v2328_v25 = vpop.f32.mrb[12].mxu1  ;;  %v1766_v55 = vadd.f32 %v2325_v53, %v1765_v61 }
 0x139   : > { %2174 = vst [vmem:[%s2901_s30 + $0x8] sm:$0xff] %v2142_v4   ;;  %v1807_v15 = vadd.f32 %v1806_v21, %v1800_v44  ;;  %v1656_v39 = vpop.f32.mrb[13].mxu1  ;;  %v1804_v22 = vmul.f32 %v2328_v25, %v2328_v25 }
 0x13a   : > { %2138 = vst [vmem:[%s2901_s30] sm:$0xff] %v2137_v3   ;;  %v1752_v54 = vadd.f32 %v2330_v6, %v1751_v41  ;;  %v1785_v56 = vadd.f32 %v1778_v7, %v1777_v5  ;;  %v2318_v14 = vpop.f32.mrb[4].mxu0  ;;  %v1767_v34 = vadd.f32 %v1766_v55, %v1656_v39  ;;  %v2329_v8 = vpop.f32.mrb[14].mxu1  ;;  %v1802_v9 = vmul.f32 %v1656_v39, %v1656_v39 }
 0x13b   : > { %v2334_v27 = vadd.f32 %v2318_v14, %v2268_v47  ;;  %v1579_v33 = vpop.f32.mrb[5].mxu0  ;;  %v1808_v10 = vadd.f32 %v1807_v15, %v1801_v52  ;;  %v1659_v40 = vpop.f32.mrb[15].mxu1  ;;  %v2172_v58 = vpack.c.bf16 %v2329_v8, %v2328_v25  ;;  %v1805_v28 = vmul.f32 %v2329_v8, %v2329_v8 }
 0x13c   : > { %v1786_v49 = vadd.f32 %v1785_v56, %v1779_v13  ;;  %v2335_v35 = vadd.f32 %v1579_v33, %v954_v62  ;;  %v1753_v63 = vadd.f32 %v2332_v46, %v1752_v54  ;;  %v2319_v43 = vpop.f32.mrb[6].mxu0  ;;  %v2167_v17 = vpack.c.bf16 %v1659_v40, %v1656_v39 }
 0x13d   : > { %v2336_v32 = vadd.f32 %v2319_v43, %v2269_v18  ;;  %v1582_v37 = vpop.f32.mrb[7].mxu0  ;;  %v1809_v0 = vadd.f32 %v1808_v10, %v1802_v9  ;;  %2179 = vst [vmem:[%s2896_s26 + $0x18] sm:$0xff] %v2172_v58   ;;  %v1768_v42 = vadd.f32 %v1767_v34, %v1659_v40  ;;  %v1803_v50 = vmul.f32 %v1659_v40, %v1659_v40 }
 0x13e   : > { %v1754_v1 = vadd.f32 %v2335_v35, %v1753_v63  ;;  %v1781_v11 = vmul.f32 %v2335_v35, %v2335_v35  ;;  %v1787_v12 = vadd.f32 %v1786_v49, %v1780_v38  ;;  %v2337_v24 = vadd.f32 %v1582_v37, %v2891_v16  ;;  %2178 = vst [vmem:[%s2896_s26 + $0x10] sm:$0xff] %v2167_v17  }
 0x13f   : > { %v2152_v19 = vpack.c.bf16 %v2336_v32, %v2334_v27  ;;  %v1769_v18 = vadd.f32 %v2328_v25, %v1768_v42  ;;  %v1810_v60 = vadd.f32 %v1809_v0, %v1803_v50  ;;  %v1783_v6 = vmul.f32 %v2334_v27, %v2334_v27 }
 0x140   : > { %v1788_v23 = vadd.f32 %v1787_v12, %v1781_v11  ;;  %v2147_v36 = vpack.c.bf16 %v2337_v24, %v2335_v35  ;;  %v1755_v47 = vadd.f32 %v2337_v24, %v1754_v1  ;;  %v1782_v62 = vmul.f32 %v2337_v24, %v2337_v24 }
 0x141   : > { %2176 = vst [vmem:[%s2901_s30 + $0x18] sm:$0xff] %v2152_v19   ;;  %v1770_v29 = vadd.f32 %v2329_v8, %v1769_v18  ;;  %v1811_v53 = vadd.f32 %v1810_v60, %v1804_v22  ;;  %v1784_v46 = vmul.f32 %v2336_v32, %v2336_v32 }
 0x142   : > { %2175 = vst [vmem:[%s2901_s30 + $0x10] sm:$0xff] %v2147_v36   ;;  %v1756_v2 = vadd.f32 %v2334_v27, %v1755_v47  ;;  %v1789_v59 = vadd.f32 %v1788_v23, %v1782_v62 }
 0x143   : > { %v1771_v30 = vrot.slane %v1770_v29, 4  ;;  %v1812_v45 = vadd.f32 %v1811_v53, %v1805_v28 }
 0x144   : > { %v1757_v16 = vadd.f32 %v2336_v32, %v1756_v2  ;;  %v1790_v26 = vadd.f32 %v1789_v59, %v1783_v6 }
 0x145   : > { %v1772_v57 = vadd.f32 %v1771_v30, %v1770_v29  ;;  %v1813_v5 = vrot.slane %v1812_v45, 4 }
 0x146   : > { %v1758_v51 = vrot.slane %v1757_v16, 4  ;;  %v1791_v48 = vadd.f32 %v1790_v26, %v1784_v46 }
 0x147   : > { %v1773_v20 = vrot.slane %v1772_v57, 2  ;;  %v1814_v3 = vadd.f32 %v1813_v5, %v1812_v45 }
 0x148   : > { %v1759_v31 = vadd.f32 %v1758_v51, %v1757_v16  ;;  %v1792_v4 = vrot.slane %v1791_v48, 4 }
 0x149   : > { %v1774_v61 = vadd.f32 %v1773_v20, %v1772_v57  ;;  %v1815_v44 = vrot.slane %v1814_v3, 2 }
 0x14a   : > { %v1760_v41 = vrot.slane %v1759_v31, 2  ;;  %v1793_v7 = vadd.f32 %v1792_v4, %v1791_v48 }
 0x14b   : > { %v1816_v54 = vadd.f32 %v1815_v44, %v1814_v3  ;;  %v1775_v14 = vrot.slane %v1774_v61, 1 }
 0x14c   : > { %v1761_v21 = vadd.f32 %v1760_v41, %v1759_v31  ;;  %v1794_v13 = vrot.slane %v1793_v7, 2 }
 0x14d   : > { %v1817_v25 = vrot.slane %v1816_v54, 1  ;;  %v1776_v27 = vadd.f32 %v1775_v14, %v1774_v61 }
 0x14e   : > { %v1795_v56 = vadd.f32 %v1794_v13, %v1793_v7  ;;  %v1762_v55 = vrot.slane %v1761_v21, 1 }
 0x14f   : > { %v1818_v52 = vadd.f32 %v1817_v25, %v1816_v54 }
 0x150   : > { %v1796_v38 = vrot.slane %v1795_v56, 1  ;;  %v1763_v39 = vadd.f32 %v1762_v55, %v1761_v21 }
 0x151   : > { %v1822_v33 = vrot.slane %v1818_v52, 7 }
 0x152   : > { %v1797_v15 = vadd.f32 %v1796_v38, %v1795_v56 }
 0x153   : > { %v1827_v35 = vsel %vm1825_vm5, %v1776_v27, %v1822_v33 }
 0x154   : > { %v1821_v49 = vrot.slane %v1797_v15, 7 }
 0x156   : > { %v1826_v63 = vsel %vm1825_vm5, %v1763_v39, %v1821_v49 }
 0x157   : > { %v1830_v34 = vcombine.low %v1826_v63, %v1827_v35 }
 0x159   : > { %2114 = vst.sshfl [vmem:[%s392_s12] sm:$0x33 pattern:$0x76325410] %v1830_v34 }
 0x15a PF: > { %s19_s27 = sadd.s32 1, %s2443_s27  }
 0x15b   : > { %p16_p5 = scmp.ge.s32.totalorder %s19_s27, 4  }
 0x15d   :  { %18 = sbr.rel (!%p16_p5) target bundleno = 1 (0x1), region = 115 }

// kernel: resblock_conv1x_forward.7
= control target key start
LH: loop header
LB: loop body
LE: loop exit
PB: predicated region body
PF: predicated region fallthrough
CT: control target
= control target key end

     0   :  { %s567_s21 = smov 0   ;;  %s665_s0 = inlined_call_operand.vmem [shape: bf16[128,128], index: 0, kind: input, shape index: {}]   ;;  %s666_s1 = inlined_call_operand.vmem [shape: bf16[128,128], index: 1, kind: input, shape index: {}]   ;;  %s667_s2 = inlined_call_operand.vmem [shape: f32[1,128], index: 2, kind: input, shape index: {}]   ;;  %s668_s3 = inlined_call_operand.vmem [shape: f32[1,128], index: 3, kind: input, shape index: {}]   ;;  %s669_s4 = inlined_call_operand.vmem [shape: f32[1,128], index: 4, kind: input, shape index: {}]   ;;  %s670_s5 = inlined_call_operand.vmem [shape: f32[1,128], index: 5, kind: input, shape index: {}]   ;;  %s671_s6 = inlined_call_operand.vmem [shape: f32[128,128], index: 6, kind: output, shape index: {}]  }
   0x1 LB: > { %s461_s22 = sadd.s32 4294967295, %s530_s21   ;;  %p465_p0 = scmp.ge.s32.totalorder %s530_s21, 1  ;;  %s530_s21 = sphi %s567_s21, %s16_s21  }
   0x2   : > { %p224_p1 = scmp.lt.s32.totalorder %s530_s21, 3 }
   0x4   : > { %p225_p2 = pnand %p465_p0, %p224_p1 }
   0x5   : > { %s466_s23 = sshll.u32 (!%p225_p2), %s461_s22, 3  ;;  %v591_v0 = vld [vmem:[%s667_s2] ss:$0 sm:$0xff] (!%p225_p2) }
   0x6   : > { %228 = sbr.rel (%p225_p2) target bundleno = 39 (0x27), region = 44  ;;  %p260_p3 = scmp.lt.s32.totalorder (!%p225_p2), %s466_s23, 15  ;;  %v596_v1 = vld [vmem:[%s669_s4] ss:$0 sm:$0xff] (!%p225_p2) }
   0x7   : > { %v605_v10 = vld [vmem:[%s668_s3] ss:$0 sm:$0xff] (!%p225_p2) }
   0x8   : > { %v610_v11 = vld [vmem:[%s670_s5] ss:$0 sm:$0xff] (!%p225_p2) }
   0xd   : > { %s673_s23 = smov (!%p260_p3, %s466_s23), 15 }
   0xe   : > { %s467_s24 = sshll.u32 %s673_s23, 2  ;;  %s471_s15 = sshll.u32 %s673_s23, 3 }
   0xf   : > { %s581_s27 = scalar_lea.vmem %s665_s0, %s467_s24  ;;  %s586_s30 = scalar_lea.vmem %s666_s1, %s467_s24 }
  0x10   : > { %v479_v2 = vld [vmem:[%s581_s27] sm:$0xff]   ;;  %v510_v4 = vld [vmem:[%s581_s27 + $0x8] sm:$0xff]   ;;  %v511_v24 = vld [vmem:[%s581_s27 + $0x10] sm:$0xff]   ;;  %s634_s18 = scalar_lea.vmem %s671_s6, %s471_s15 }
  0x11   : > { %v495_v3 = vld [vmem:[%s586_s30] sm:$0xff]   ;;  %v480_v5 = vunpack.c.l.bf16 %v479_v2  ;;  %v481_v7 = vunpack.c.h.bf16 %v479_v2  ;;  %v513_v9 = vld [vmem:[%s586_s30 + $0x8] sm:$0xff]   ;;  %v484_v12 = vunpack.c.l.bf16 %v510_v4  ;;  %v485_v14 = vunpack.c.h.bf16 %v510_v4  ;;  %v514_v25 = vld [vmem:[%s586_s30 + $0x10] sm:$0xff]  }
  0x12   : > { %v496_v6 = vunpack.c.l.bf16 %v495_v3  ;;  %v497_v8 = vunpack.c.h.bf16 %v495_v3  ;;  %v500_v13 = vunpack.c.l.bf16 %v513_v9  ;;  %v501_v15 = vunpack.c.h.bf16 %v513_v9  ;;  %v512_v42 = vld [vmem:[%s581_s27 + $0x18] sm:$0xff]  }
  0x13   : > { %v300_v16 = vmul.f32 %v480_v5, %v591_v0  ;;  %v301_v18 = vmul.f32 %v481_v7, %v591_v0  ;;  %v302_v20 = vmul.f32 %v484_v12, %v591_v0  ;;  %v303_v22 = vmul.f32 %v485_v14, %v591_v0  ;;  %v515_v43 = vld [vmem:[%s586_s30 + $0x18] sm:$0xff]  }
  0x14   : > { %v346_v17 = vmul.f32 %v496_v6, %v596_v1  ;;  %v347_v19 = vmul.f32 %v497_v8, %v596_v1  ;;  %v348_v21 = vmul.f32 %v500_v13, %v596_v1  ;;  %v349_v23 = vmul.f32 %v501_v15, %v596_v1 }
  0x15   : > { %v315_v26 = vadd.f32 %v605_v10, %v300_v16  ;;  %v316_v28 = vadd.f32 %v605_v10, %v301_v18  ;;  %v317_v30 = vadd.f32 %v605_v10, %v302_v20  ;;  %v318_v32 = vadd.f32 %v605_v10, %v303_v22 }
  0x16   : > { %v361_v27 = vadd.f32 %v610_v11, %v346_v17  ;;  %v362_v29 = vadd.f32 %v610_v11, %v347_v19  ;;  %v363_v31 = vadd.f32 %v610_v11, %v348_v21  ;;  %v364_v33 = vadd.f32 %v610_v11, %v349_v23 }
  0x17   : > { %v488_v36 = vunpack.c.l.bf16 %v511_v24  ;;  %v504_v37 = vunpack.c.l.bf16 %v514_v25  ;;  %v489_v40 = vunpack.c.h.bf16 %v511_v24  ;;  %v505_v41 = vunpack.c.h.bf16 %v514_v25 }
  0x18   : > { %v369_v34 = vadd.f32 %v361_v27, %v315_v26  ;;  %v370_v35 = vadd.f32 %v362_v29, %v316_v28  ;;  %v371_v38 = vadd.f32 %v363_v31, %v317_v30  ;;  %v372_v39 = vadd.f32 %v364_v33, %v318_v32 }
  0x19   : > { %v304_v46 = vmul.f32 %v488_v36, %v591_v0  ;;  %v350_v47 = vmul.f32 %v504_v37, %v596_v1  ;;  %v305_v50 = vmul.f32 %v489_v40, %v591_v0  ;;  %v351_v51 = vmul.f32 %v505_v41, %v596_v1 }
  0x1a   : > { %v377_v44 = vmax.f32 %v369_v34, 0.0  ;;  %v378_v45 = vmax.f32 %v370_v35, 0.0  ;;  %v379_v48 = vmax.f32 %v371_v38, 0.0  ;;  %v380_v49 = vmax.f32 %v372_v39, 0.0 }
  0x1b   : > { %v319_v52 = vadd.f32 %v605_v10, %v304_v46  ;;  %v365_v53 = vadd.f32 %v610_v11, %v350_v47  ;;  %v492_v54 = vunpack.c.l.bf16 %v512_v42  ;;  %v508_v55 = vunpack.c.l.bf16 %v515_v43 }
  0x1c   : > { %385 = vst [vmem:[%s634_s18] sm:$0xff] %v377_v44  ;;  %386 = vst [vmem:[%s634_s18 + $0x8] sm:$0xff] %v378_v45  ;;  %v320_v56 = vadd.f32 %v605_v10, %v305_v50  ;;  %v366_v57 = vadd.f32 %v610_v11, %v351_v51  ;;  %v493_v58 = vunpack.c.h.bf16 %v512_v42  ;;  %v509_v59 = vunpack.c.h.bf16 %v515_v43 }
  0x1d   : > { %387 = vst [vmem:[%s634_s18 + $0x10] sm:$0xff] %v379_v48  ;;  %388 = vst [vmem:[%s634_s18 + $0x18] sm:$0xff] %v380_v49  ;;  %v373_v60 = vadd.f32 %v365_v53, %v319_v52  ;;  %v306_v61 = vmul.f32 %v492_v54, %v591_v0  ;;  %v352_v62 = vmul.f32 %v508_v55, %v596_v1 }
  0x1e   : > { %v374_v63 = vadd.f32 %v366_v57, %v320_v56  ;;  %v307_v2 = vmul.f32 %v493_v58, %v591_v0  ;;  %v353_v3 = vmul.f32 %v509_v59, %v596_v1 }
  0x1f   : > { %v381_v4 = vmax.f32 %v373_v60, 0.0  ;;  %v321_v5 = vadd.f32 %v605_v10, %v306_v61  ;;  %v367_v6 = vadd.f32 %v610_v11, %v352_v62 }
  0x20   : > { %v382_v7 = vmax.f32 %v374_v63, 0.0  ;;  %v322_v8 = vadd.f32 %v605_v10, %v307_v2  ;;  %v368_v9 = vadd.f32 %v610_v11, %v353_v3 }
  0x21   : > { %389 = vst [vmem:[%s634_s18 + $0x20] sm:$0xff] %v381_v4  ;;  %v375_v12 = vadd.f32 %v367_v6, %v321_v5 }
  0x22   : > { %390 = vst [vmem:[%s634_s18 + $0x28] sm:$0xff] %v382_v7  ;;  %v376_v13 = vadd.f32 %v368_v9, %v322_v8 }
  0x23   : > { %v383_v14 = vmax.f32 %v375_v12, 0.0 }
  0x24   : > { %v384_v15 = vmax.f32 %v376_v13, 0.0 }
  0x25   : > { %391 = vst [vmem:[%s634_s18 + $0x30] sm:$0xff] %v383_v14 }
  0x26   : > { %392 = vst [vmem:[%s634_s18 + $0x38] sm:$0xff] %v384_v15 }
  0x27 PF: > { %s16_s21 = sadd.s32 1, %s530_s21  }
  0x28   : > { %p13_p4 = scmp.ge.s32.totalorder %s16_s21, 4  }
  0x2a   :  { %15 = sbr.rel (!%p13_p4) target bundleno = 1 (0x1), region = 77 }

// kernel: resblock_conv1x_forward.6
= control target key start
LH: loop header
LB: loop body
LE: loop exit
PB: predicated region body
PF: predicated region fallthrough
CT: control target
= control target key end

     0   :  { %s2199_s12 = smov 0   ;;  %s2636_s0 = inlined_call_operand.vmem [shape: bf16[2,10,10,128], index: 0, kind: input, shape index: {}]   ;;  %s2637_s1 = inlined_call_operand.vmem [shape: bf16[3,384,128], index: 1, kind: input, shape index: {}]   ;;  %s2638_s2 = inlined_call_operand.vmem [shape: bf16[128,128], index: 2, kind: output, shape index: {0}]   ;;  %s2639_s3 = inlined_call_operand.vmem [shape: f32[2,2,128], index: 3, kind: output, shape index: {1}]  }
   0x1 LB: > { %s2205_s13 = sadd.s32 4294967295, %s2177_s12   ;;  %p1552_p0 = scmp.ge.s32.totalorder %s2177_s12, 1  ;;  %s2177_s12 = sphi %s2199_s12, %s14_s12  }
   0x2   : > { %p140_p1 = scmp.lt.s32.totalorder %s2177_s12, 3 }
   0x4   : > { %p141_p2 = pnand %p1552_p0, %p140_p1 }
   0x5   : > { %v2080_v0 = vld [vmem:[%s2637_s1 + $0x100] sm:$0xff] (!%p141_p2)   ;;  %v2083_v3 = vld [vmem:[%s2637_s1 + $0x108] sm:$0xff] (!%p141_p2)   ;;  %v2086_v6 = vld [vmem:[%s2637_s1 + $0x110] sm:$0xff] (!%p141_p2)   ;;  %p168_p3 = scmp.lt.s32.totalorder (!%p141_p2), %s2205_s13, 1  ;;  %vm1458_vm0 = vcmask (!%p141_p2), 1040384  }
   0x6   : > { %144 = sbr.rel (%p141_p2) target bundleno = 366 (0x16e), region = 28  ;;  %v2081_v1 = vld [vmem:[%s2637_s1 + $0x140] sm:$0xff] (!%p141_p2)   ;;  %1803 = vmatprep.subr.bf16.mxu0 (!%p141_p2), %v2080_v0  ;;  %v2084_v4 = vld [vmem:[%s2637_s1 + $0x148] sm:$0xff] (!%p141_p2)   ;;  %v2087_v7 = vld [vmem:[%s2637_s1 + $0x150] sm:$0xff] (!%p141_p2)  }
   0x7   : > { %v2082_v2 = vld [vmem:[%s2637_s1 + $0xc0] sm:$0xff] (!%p141_p2)   ;;  %1959 = vmatprep.subr.bf16.mxu1 (!%p141_p2), %v2081_v1  ;;  %v2085_v5 = vld [vmem:[%s2637_s1 + $0xc8] sm:$0xff] (!%p141_p2)   ;;  %v2088_v8 = vld [vmem:[%s2637_s1 + $0xd0] sm:$0xff] (!%p141_p2)  }
   0x8   : > { %1804 = vmatpush3.bf16.msra.mxu0 (!%p141_p2), %v2082_v2  ;;  %1960 = vmatpush3.bf16.msra.mxu1 (!%p141_p2), %v2081_v1  ;;  %v2089_v9 = vld [vmem:[%s2637_s1 + $0x118] sm:$0xff] (!%p141_p2)   ;;  %v2092_v12 = vld [vmem:[%s2637_s1 + $0x120] sm:$0xff] (!%p141_p2)   ;;  %v2095_v15 = vld [vmem:[%s2637_s1 + $0x128] sm:$0xff] (!%p141_p2)  }
   0x9   : > { %1805 = vmatprep.subr.bf16.mxu0 (!%p141_p2), %v2083_v3  ;;  %1961 = vmatprep.subr.bf16.mxu1 (!%p141_p2), %v2084_v4  ;;  %v2090_v10 = vld [vmem:[%s2637_s1 + $0x158] sm:$0xff] (!%p141_p2)   ;;  %v2093_v13 = vld [vmem:[%s2637_s1 + $0x160] sm:$0xff] (!%p141_p2)   ;;  %v2096_v16 = vld [vmem:[%s2637_s1 + $0x168] sm:$0xff] (!%p141_p2)  }
   0xa   : > { %v2091_v11 = vld [vmem:[%s2637_s1 + $0xd8] sm:$0xff] (!%p141_p2)   ;;  %v2094_v14 = vld [vmem:[%s2637_s1 + $0xe0] sm:$0xff] (!%p141_p2)   ;;  %v2097_v17 = vld [vmem:[%s2637_s1 + $0xe8] sm:$0xff] (!%p141_p2)  }
   0xb   : > { %v2098_v18 = vld [vmem:[%s2637_s1 + $0x130] sm:$0xff] (!%p141_p2)   ;;  %v2101_v21 = vld [vmem:[%s2637_s1 + $0x138] sm:$0xff] (!%p141_p2)   ;;  %v2108_v39 = vld [vmem:[%s2637_s1 + $0x40] sm:$0xff] (!%p141_p2)  }
   0xc   : > { %1806 = vmatpush3.bf16.msra.mxu0 (!%p141_p2), %v2085_v5  ;;  %1962 = vmatpush3.bf16.msra.mxu1 (!%p141_p2), %v2084_v4  ;;  %v2099_v19 = vld [vmem:[%s2637_s1 + $0x170] sm:$0xff] (!%p141_p2)   ;;  %v2102_v22 = vld [vmem:[%s2637_s1 + $0x178] sm:$0xff] (!%p141_p2)   ;;  %v2109_v41 = vld [vmem:[%s2637_s1 + $0x80] sm:$0xff] (!%p141_p2)  }
   0xd   : > { %1807 = vmatprep.subr.bf16.mxu0 %v2086_v6  ;;  %1963 = vmatprep.subr.bf16.mxu1 %v2087_v7  ;;  %s2253_s17 = scalar_select %p168_p3, %s2205_s13, 1  ;;  %v2100_v20 = vld [vmem:[%s2637_s1 + $0xf0] sm:$0xff]   ;;  %v2103_v32 = vld [vmem:[%s2637_s1 + $0xf8] sm:$0xff]   ;;  %v2111_v52 = vld [vmem:[%s2637_s1] sm:$0xff]  }
   0xe   : > { %v2113_v53 = vld [vmem:[%s2637_s1 + $0x88] sm:$0xff]   ;;  %v2116_v2 = vld [vmem:[%s2637_s1 + $0x50] sm:$0xff]  }
   0xf   : > { %s2071_s24 = smul.u32 80, %s2253_s17  ;;  %v2112_v60 = vld [vmem:[%s2637_s1 + $0x48] sm:$0xff]   ;;  %v2117_v3 = vld [vmem:[%s2637_s1 + $0x90] sm:$0xff]   ;;  %s1556_s25 = sshll.u32 %s2253_s17, 1 }
  0x10   : > { %1808 = vmatpush3.bf16.msra.mxu0 %v2088_v8  ;;  %1964 = vmatpush3.bf16.msra.mxu1 %v2087_v7  ;;  %v2114_v63 = vld [vmem:[%s2637_s1 + $0x8] sm:$0xff]   ;;  %v2118_v5 = vld [vmem:[%s2637_s1 + $0x10] sm:$0xff]   ;;  %s182_s28 = scalar_lea.vmem %s2639_s3, %s1556_s25 }
  0x11   : > { %1809 = vmatprep.subr.bf16.mxu0 %v2089_v9  ;;  %1965 = vmatprep.subr.bf16.mxu1 %v2090_v10  ;;  %s2277_s6 = scalar_lea.vmem %s2636_s0, %s2071_s24 }
  0x12   : > { %v2289_v23 = vld [vmem:[%s2277_s6 + $0x8] sm:$0xf]  ;;  %v187_v24 = vld [vmem:[%s2277_s6 + $0xc] sm:$0x1]  ;;  %v2293_v25 = vld [vmem:[%s2277_s6 + $0x10] sm:$0xf] }
  0x13   : > { %v189_v26 = vld [vmem:[%s2277_s6 + $0x14] sm:$0x1]  ;;  %v2297_v27 = vcombine.low %v2289_v23, %v187_v24  ;;  %v2300_v28 = vld [vmem:[%s2277_s6 + $0x18] sm:$0xf]  ;;  %v191_v29 = vld [vmem:[%s2277_s6 + $0x1c] sm:$0x1]  ;;  %v1614_v51 = vcombine.low %v2289_v23, %v2293_v25 }
  0x14   : > { %1810 = vmatpush3.bf16.msra.mxu0 %v2091_v11  ;;  %1966 = vmatpush3.bf16.msra.mxu1 %v2090_v10  ;;  %v2304_v30 = vcombine.low %v2293_v25, %v189_v26  ;;  %v2307_v31 = vcombine.low %v2300_v28, %v191_v29  ;;  %v2325_v42 = vld [vmem:[%s2277_s6 + $0x20] sm:$0xf]  ;;  %v193_v43 = vld [vmem:[%s2277_s6 + $0x24] sm:$0x1]  ;;  %v2381_v6 = vld [vmem:[%s2277_s6 + $0x28] sm:$0xf] }
  0x15   : > { %1811 = vmatprep.subr.bf16.mxu0 %v2092_v12  ;;  %1967 = vmatprep.subr.bf16.mxu1 %v2093_v13  ;;  %v252_v33 = vshrl.u32 %v2297_v27, 16  ;;  %v254_v34 = vshll.u32 %v2297_v27, 16  ;;  %v301_v35 = vrot.slane %v2297_v27, 1  ;;  %v2334_v47 = vcombine.low %v2325_v42, %v193_v43  ;;  %v195_v7 = vld [vmem:[%s2277_s6 + $0x2c] sm:$0x1]  ;;  %v2120_v12 = vld [vmem:[%s2637_s1 + $0x98] sm:$0xff]  }
  0x16   : > { %v259_v36 = vshrl.u32 %v2304_v30, 16  ;;  %v261_v37 = vshll.u32 %v2304_v30, 16  ;;  %v302_v38 = vrot.slane %v2304_v30, 1  ;;  %v303_v45 = vrot.slane %v2307_v31, 1  ;;  %v2385_v8 = vld [vmem:[%s2277_s6 + $0x30] sm:$0xf] }
  0x17   : > { %v256_v40 = vrot.slane %v254_v34, 1  ;;  %v304_v50 = vrot.slane %v2334_v47, 1  ;;  %v266_v54 = vshrl.u32 %v2307_v31, 16  ;;  %v268_v55 = vshll.u32 %v2307_v31, 16  ;;  %v197_v10 = vld [vmem:[%s2277_s6 + $0x34] sm:$0x1] }
  0x18   : > { %1812 = vmatpush3.bf16.msra.mxu0 %v2094_v14  ;;  %1968 = vmatpush3.bf16.msra.mxu1 %v2093_v13  ;;  %v263_v44 = vrot.slane %v261_v37, 1  ;;  %v1616_v46 = vcombine.low %v301_v35, %v302_v38  ;;  %v273_v58 = vshrl.u32 %v2334_v47, 16  ;;  %v275_v59 = vshll.u32 %v2334_v47, 16  ;;  %v2119_v14 = vld [vmem:[%s2637_s1 + $0x58] sm:$0xff]   ;;  %v2125_v26 = vld [vmem:[%s2637_s1 + $0x60] sm:$0xff]   ;;  %v2145_v30 = vld [vmem:[%s2637_s1 + $0x1c8] sm:$0xff]  }
  0x19   : > { %1813 = vmatprep.subr.bf16.mxu0 %v2095_v15  ;;  %1969 = vmatprep.subr.bf16.mxu1 %v2096_v16  ;;  %v2336_v48 = vor.u32 %v256_v40, %v252_v33  ;;  %v1619_v57 = vcombine.low %v303_v45, %v304_v50  ;;  %v270_v61 = vrot.slane %v268_v55, 1  ;;  %v1617_v9 = vcombine.low %v2300_v28, %v2325_v42  ;;  %v2418_v29 = vld [vmem:[%s2277_s6 + $0x38] sm:$0xf]  ;;  %v2127_v34 = vld [vmem:[%s2637_s1 + $0x20] sm:$0xff]   ;;  %v2149_v47 = vld [vmem:[%s2637_s1 + $0x1d0] sm:$0xff]  }
  0x1a   : > { %v2338_v49 = vor.u32 %v263_v44, %v259_v36  ;;  %1975 = vmatprep.mubr.bf16.mxu1 %v1616_v46  ;;  %v277_v62 = vrot.slane %v275_v59, 1  ;;  %v2391_v11 = vcombine.low %v2381_v6, %v195_v7  ;;  %v2397_v13 = vcombine.low %v2385_v8, %v197_v10  ;;  %v199_v36 = vld [vmem:[%s2277_s6 + $0x3c] sm:$0x1]  ;;  %v2428_v37 = vld [vmem:[%s2277_s6 + $0x40] sm:$0xf] }
  0x1b   : > { %v2365_v0 = vor.u32 %v270_v61, %v266_v54  ;;  %v1620_v40 = vcombine.low %v2381_v6, %v2385_v8  ;;  %v2437_v43 = vcombine.low %v2418_v29, %v199_v36  ;;  %v184_v7 = vld [vmem:[%s2277_s6] sm:$0xf] }
  0x1c   : > { %1814 = vmatpush3.bf16.msra.mxu0 %v2097_v17  ;;  %1970 = vmatpush3.bf16.msra.mxu1 %v2096_v16  ;;  %v1615_v56 = vcombine.low %v2336_v48, %v2338_v49  ;;  %v2367_v1 = vor.u32 %v277_v62, %v273_v58  ;;  %v280_v15 = vshrl.u32 %v2391_v11, 16  ;;  %v282_v16 = vshll.u32 %v2391_v11, 16 }
  0x1d   : > { %1815 = vmatprep.subr.bf16.mxu0 %v2098_v18  ;;  %1971 = vmatprep.subr.bf16.mxu1 %v2099_v19  ;;  %v287_v17 = vshrl.u32 %v2397_v13, 16  ;;  %v289_v18 = vshll.u32 %v2397_v13, 16  ;;  %v306_v46 = vrot.slane %v2397_v13, 1  ;;  %v296_v54 = vshll.u32 %v2437_v43, 16 }
  0x1e   : > { %636 = vmatprep.mubr.bf16.mxu0 %v1615_v56  ;;  %v1618_v4 = vcombine.low %v2365_v0, %v2367_v1  ;;  %v307_v59 = vrot.slane %v2437_v43, 1  ;;  %v2518_v31 = vcombine.low %v2338_v49, %v2365_v0  ;;  %v1653_v49 = vcombine.low %v2293_v25, %v2300_v28  ;;  %v2153_v0 = vld [vmem:[%s2637_s1 + $0x218] sm:$0xff]   ;;  %v2157_v28 = vld [vmem:[%s2637_s1 + $0x220] sm:$0xff]  }
  0x1f   : > { %v298_v61 = vrot.slane %v296_v54, 1  ;;  %v2154_v25 = vld [vmem:[%s2637_s1 + $0x198] sm:$0xff]   ;;  %v2163_v54 = vld [vmem:[%s2637_s1 + $0x1f0] sm:$0xff]  }
  0x20   : > { %1816 = vmatpush3.bf16.msra.mxu0 %v2100_v20  ;;  %1972 = vmatpush3.bf16.msra.mxu1 %v2099_v19  ;;  %v2121_v19 = vld [vmem:[%s2637_s1 + $0x18] sm:$0xff]   ;;  %v284_v20 = vrot.slane %v282_v16, 1 }
  0x21   : > { %1817 = vmatprep.subr.bf16.mxu0 %v2101_v21  ;;  %1973 = vmatprep.subr.bf16.mxu1 %v2102_v22  ;;  %v291_v21 = vrot.slane %v289_v18, 1  ;;  %v2138_v16 = vld [vmem:[%s2637_s1 + $0xb8] sm:$0xff]  }
  0x22   : > { %v2412_v24 = vor.u32 %v284_v20, %v280_v15 }
  0x23   : > { %v2421_v33 = vor.u32 %v291_v21, %v287_v17  ;;  %v2137_v17 = vld [vmem:[%s2637_s1 + $0x78] sm:$0xff]  }
  0x24   : > { %1818 = vmatpush3.bf16.msra.mxu0 %v2103_v32  ;;  %1974 = vmatpush3.bf16.msra.mxu1 %v2102_v22  ;;  %v2126_v22 = vld [vmem:[%s2637_s1 + $0xa0] sm:$0xff]   ;;  %v305_v32 = vrot.slane %v2391_v11, 1  ;;  %v2139_v21 = vld [vmem:[%s2637_s1 + $0x38] sm:$0xff]   ;;  %v1657_v13 = vcombine.low %v2367_v1, %v2412_v24  ;;  %v1656_v1 = vcombine.low %v2325_v42, %v2381_v6  ;;  %v2161_v6 = vld [vmem:[%s2637_s1 + $0x1a8] sm:$0xff]  }
  0x25   : > { %1855 = vmatprep.subr.bf16.mxu0 %v2108_v39  ;;  %1983 = vmatprep.subr.bf16.mxu1 %v2109_v41  ;;  %v201_v39 = vld [vmem:[%s2277_s6 + $0x44] sm:$0x1]  ;;  %v2152_v11 = vld [vmem:[%s2637_s1 + $0x1d8] sm:$0xff]  }
  0x26   : > { %v2440_v44 = vcombine.low %v2428_v37, %v201_v39  ;;  %v1622_v58 = vcombine.low %v305_v32, %v306_v46  ;;  %v2142_v39 = vld [vmem:[%s2637_s1 + $0x1c0] sm:$0xff]  }
  0x27   : > { %1976 = vmatmul.mubr.bf16.vlgmr.msra.gmra.mrb[0].mxu1 %v1619_v57  ;;  %637 = vmatmul.mubr.bf16.vlgmr.msra.gmra.mrb[0].mxu0 %v1614_v51  ;;  %v1621_v51 = vcombine.low %v2412_v24, %v2421_v33  ;;  %v2130_v57 = vld [vmem:[%s2637_s1 + $0x28] sm:$0xff]  }
  0x28   : > { %1984 = vmatpush3.bf16.msra.mxu1 %v2109_v41  ;;  %1856 = vmatpush3.bf16.msra.mxu0 %v2111_v52  ;;  %v2128_v41 = vld [vmem:[%s2637_s1 + $0x68] sm:$0xff]   ;;  %v378_v55 = vshrl.u32 %v2440_v44, 16  ;;  %v380_v56 = vshll.u32 %v2440_v44, 16 }
  0x29   : > { %1985 = vmatprep.subr.bf16.mxu1 %v2113_v53  ;;  %1857 = vmatprep.subr.bf16.mxu0 %v2112_v60  ;;  %v2129_v52 = vld [vmem:[%s2637_s1 + $0xa8] sm:$0xff]   ;;  %v384_v60 = vrot.slane %v2440_v44, 1 }
  0x2a   : > { %644 = vmatprep.mubr.bf16.mxu0 %v1618_v4  ;;  %v382_v62 = vrot.slane %v380_v56, 1  ;;  %1979 = vmatprep.mubr.bf16.mxu1 %v1622_v58  ;;  %v202_v24 = vld [vmem:[%s2277_s6 + $0x48] sm:$0xf]  ;;  %v2167_v56 = vld [vmem:[%s2637_s1 + $0x238] sm:$0xff]   ;;  %v203_v58 = vld [vmem:[%s2277_s6 + $0x4c] sm:$0x1] }
  0x2c   : > { %1986 = vmatpush3.bf16.msra.mxu1 %v2113_v53  ;;  %1858 = vmatpush3.bf16.msra.mxu0 %v2114_v63  ;;  %v294_v53 = vshrl.u32 %v2437_v43, 16  ;;  %v2135_v63 = vld [vmem:[%s2637_s1 + $0xb0] sm:$0xff]   ;;  %v2470_v4 = vor.u32 %v382_v62, %v378_v55  ;;  %v2158_v43 = vld [vmem:[%s2637_s1 + $0x1a0] sm:$0xff]  }
  0x2d   : > { %1859 = vmatprep.subr.bf16.mxu0 %v2116_v2  ;;  %1987 = vmatprep.subr.bf16.mxu1 %v2117_v3  ;;  %v1625_v2 = vcombine.low %v307_v59, %v384_v60  ;;  %v2165_v55 = vld [vmem:[%s2637_s1 + $0x1b0] sm:$0xff]  }
  0x2f   : > { %645 = vmatmul.mubr.bf16.gmra.mrb[4].mxu0 %v1617_v9  ;;  %1980 = vmatmul.mubr.bf16.gmra.mrb[4].mxu1 %v1625_v2  ;;  %v185_v9 = vld [vmem:[%s2277_s6 + $0x4] sm:$0x1]  ;;  %s1554_s6 = sshll.u32 %s2205_s13, 3 }
  0x30   : > { %1988 = vmatpush3.bf16.msra.mxu1 %v2117_v3  ;;  %1860 = vmatpush3.bf16.msra.mxu0 %v2118_v5  ;;  %v2468_v3 = vor.u32 %v298_v61, %v294_v53  ;;  %v2134_v5 = vld [vmem:[%s2637_s1 + $0x70] sm:$0xff]   ;;  %v1557_v15 = vcombine.low %v184_v7, %v185_v9  ;;  %v2159_v53 = vld [vmem:[%s2637_s1 + $0x1e8] sm:$0xff]   ;;  %p174_p4 = scmp.lt.s32.totalorder %s1554_s6, 15 }
  0x31   : > { %1989 = vmatprep.subr.bf16.mxu1 %v2120_v12  ;;  %1861 = vmatprep.subr.bf16.mxu0 %v2119_v14  ;;  %v2136_v14 = vld [vmem:[%s2637_s1 + $0x30] sm:$0xff]  }
  0x32   : > { %652 = vmatprep.mubr.bf16.mxu0 %v1621_v51  ;;  %v1624_v10 = vcombine.low %v2468_v3, %v2470_v4  ;;  %v245_v18 = vshrl.u32 %v1557_v15, 16  ;;  %v300_v20 = vrot.slane %v1557_v15, 1  ;;  %v2146_v51 = vld [vmem:[%s2637_s1 + $0x208] sm:$0xff]   ;;  %v1660_v42 = vcombine.low %v2421_v33, %v2468_v3  ;;  %s2641_s6 = smov (!%p174_p4, %s1554_s6), 15 }
  0x33   : > { %v1659_v33 = vcombine.low %v2385_v8, %v2418_v29  ;;  %v2168_v8 = vld [vmem:[%s2637_s1 + $0x1b8] sm:$0xff]   ;;  %s1555_s13 = sshll.u32 %s2641_s6, 2 }
  0x34   : > { %1990 = vmatpush3.bf16.msra.mxu1 %v2120_v12  ;;  %1862 = vmatpush3.bf16.msra.mxu0 %v2121_v19  ;;  %v1623_v12 = vcombine.low %v2418_v29, %v2428_v37  ;;  %v247_v19 = vshll.u32 %v1557_v15, 16  ;;  %v1686_v29 = vcombine.low %v202_v24, %v203_v58  ;;  %s2619_s24 = scalar_lea.vmem %s2638_s2, %s1555_s13 }
  0x35   : > { %1991 = vmatprep.subr.bf16.mxu1 %v2126_v22  ;;  %1863 = vmatprep.subr.bf16.mxu0 %v2125_v26  ;;  %v1652_v26 = vcombine.low %v300_v20, %v301_v35  ;;  %v1650_v35 = vcombine.low %v184_v7, %v2289_v23  ;;  %v2524_v23 = vcombine.low %v304_v50, %v305_v32  ;;  %v2151_v50 = vld [vmem:[%s2637_s1 + $0x190] sm:$0xff]   ;;  %v2156_v32 = vld [vmem:[%s2637_s1 + $0x1e0] sm:$0xff]  }
  0x36   : > { %v1040_v61 = vshll.u32 %v1686_v29, 16 }
  0x37   : > { %653 = vmatmul.mubr.bf16.gmra.mrb[8].mxu0 %v1620_v40  ;;  %1999 = vmatprep.mubr.bf16.mxu1 %v1652_v26  ;;  %v1655_v40 = vcombine.low %v302_v38, %v303_v45  ;;  %v2147_v38 = vld [vmem:[%s2637_s1 + $0x188] sm:$0xff]   ;;  %v2150_v45 = vld [vmem:[%s2637_s1 + $0x210] sm:$0xff]  }
  0x38   : > { %1992 = vmatpush3.bf16.msra.mxu1 %v2126_v22  ;;  %1864 = vmatpush3.bf16.msra.mxu0 %v2127_v34  ;;  %v249_v22 = vrot.slane %v247_v19, 1  ;;  %v2143_v34 = vld [vmem:[%s2637_s1 + $0x200] sm:$0xff]   ;;  %v1042_v2 = vrot.slane %v1040_v61, 1 }
  0x39   : > { %1993 = vmatprep.subr.bf16.mxu1 %v2129_v52  ;;  %1865 = vmatprep.subr.bf16.mxu0 %v2128_v41  ;;  %v2144_v41 = vld [vmem:[%s2637_s1 + $0x180] sm:$0xff]  }
  0x3a   : > { %660 = vmatprep.mubr.bf16.mxu0 %v1624_v10  ;;  %v250_v36 = vor.u32 %v249_v22, %v245_v18 }
  0x3c   : > { %1994 = vmatpush3.bf16.msra.mxu1 %v2129_v52  ;;  %1866 = vmatpush3.bf16.msra.mxu0 %v2130_v57  ;;  %v1651_v27 = vcombine.low %v250_v36, %v2336_v48  ;;  %v1661_v48 = vcombine.low %v306_v46, %v307_v59  ;;  %v2160_v46 = vld [vmem:[%s2637_s1 + $0x228] sm:$0xff]   ;;  %v1735_v52 = vcombine.low %v2428_v37, %v202_v24  ;;  %v2164_v37 = vld [vmem:[%s2637_s1 + $0x230] sm:$0xff]   ;;  %v2166_v57 = vld [vmem:[%s2637_s1 + $0x1f8] sm:$0xff]   ;;  %v1044_v59 = vrot.slane %v1686_v29, 1 }
  0x3d   : > { %1995 = vmatprep.subr.bf16.mxu1 %v2135_v63  ;;  %1867 = vmatprep.subr.bf16.mxu0 %v2134_v5 }
  0x3e   : > { %v1737_v62 = vcombine.low %v384_v60, %v1044_v59 }
  0x3f   : > { %661 = vmatmul.mubr.bf16.gmra.mrb[12].mxu0 %v1623_v12 }
  0x40   : > { %1996 = vmatpush3.bf16.msra.mxu1 %v2135_v63  ;;  %1868 = vmatpush3.bf16.msra.mxu0 %v2136_v14  ;;  %v1038_v63 = vshrl.u32 %v1686_v29, 16 }
  0x41   : > { %1997 = vmatprep.subr.bf16.mxu1 %v2138_v16  ;;  %1869 = vmatprep.subr.bf16.mxu0 %v2137_v17 }
  0x42   : > { %934 = vmatprep.mubr.bf16.mxu0 %v1651_v27  ;;  %v1043_v3 = vor.u32 %v1042_v2, %v1038_v63 }
  0x44   : > { %1998 = vmatpush3.bf16.msra.mxu1 %v2138_v16  ;;  %1870 = vmatpush3.bf16.msra.mxu0 %v2139_v21  ;;  %v1736_v5 = vcombine.low %v2470_v4, %v1043_v3 }
  0x45   : > { %2007 = vmatprep.subr.bf16.mxu1 %v2143_v34  ;;  %1907 = vmatprep.subr.bf16.mxu0 %v2142_v39 }
  0x47   : > { %2000 = vmatmul.mubr.bf16.vlgmr.msra.gmra.mrb[0].mxu1 %v1655_v40  ;;  %935 = vmatmul.mubr.bf16.vlgmr.msra.gmra.mrb[16].mxu0 %v1650_v35 }
  0x48   : > { %2008 = vmatpush3.bf16.msra.mxu1 %v2143_v34  ;;  %1908 = vmatpush3.bf16.msra.mxu0 %v2144_v41 }
  0x49   : > { %2009 = vmatprep.subr.bf16.mxu1 %v2146_v51  ;;  %1909 = vmatprep.subr.bf16.mxu0 %v2145_v30 }
  0x4a   : > { %942 = vmatprep.mubr.bf16.mxu0 %v2518_v31  ;;  %2003 = vmatprep.mubr.bf16.mxu1 %v2524_v23 }
  0x4c   : > { %2010 = vmatpush3.bf16.msra.mxu1 %v2146_v51  ;;  %1910 = vmatpush3.bf16.msra.mxu0 %v2147_v38 }
  0x4d   : > { %2011 = vmatprep.subr.bf16.mxu1 %v2150_v45  ;;  %1911 = vmatprep.subr.bf16.mxu0 %v2149_v47 }
  0x4f   : > { %2004 = vmatmul.mubr.bf16.gmra.mrb[4].mxu1 %v1661_v48  ;;  %943 = vmatmul.mubr.bf16.gmra.mrb[20].mxu0 %v1653_v49 }
  0x50   : > { %2012 = vmatpush3.bf16.msra.mxu1 %v2150_v45  ;;  %1912 = vmatpush3.bf16.msra.mxu0 %v2151_v50 }
  0x51   : > { %2013 = vmatprep.subr.bf16.mxu1 %v2153_v0  ;;  %1913 = vmatprep.subr.bf16.mxu0 %v2152_v11 }
  0x52   : > { %950 = vmatprep.mubr.bf16.mxu0 %v1657_v13  ;;  %2023 = vmatprep.mubr.bf16.mxu1 %v1655_v40 }
  0x54   : > { %2014 = vmatpush3.bf16.msra.mxu1 %v2153_v0  ;;  %1914 = vmatpush3.bf16.msra.mxu0 %v2154_v25 }
  0x55   : > { %2015 = vmatprep.subr.bf16.mxu1 %v2157_v28  ;;  %1915 = vmatprep.subr.bf16.mxu0 %v2156_v32 }
  0x57   : > { %951 = vmatmul.mubr.bf16.gmra.mrb[24].mxu0 %v1656_v1 }
  0x58   : > { %2016 = vmatpush3.bf16.msra.mxu1 %v2157_v28  ;;  %1916 = vmatpush3.bf16.msra.mxu0 %v2158_v43 }
  0x59   : > { %2017 = vmatprep.subr.bf16.mxu1 %v2160_v46  ;;  %1917 = vmatprep.subr.bf16.mxu0 %v2159_v53 }
  0x5a   : > { %958 = vmatprep.mubr.bf16.mxu0 %v1660_v42 }
  0x5c   : > { %2018 = vmatpush3.bf16.msra.mxu1 %v2160_v46  ;;  %1918 = vmatpush3.bf16.msra.mxu0 %v2161_v6 }
  0x5d   : > { %2019 = vmatprep.subr.bf16.mxu1 %v2164_v37  ;;  %1919 = vmatprep.subr.bf16.mxu0 %v2163_v54 }
  0x5f   : > { %959 = vmatmul.mubr.bf16.gmra.mrb[28].mxu0 %v1659_v33 }
  0x60   : > { %2020 = vmatpush3.bf16.msra.mxu1 %v2164_v37  ;;  %1920 = vmatpush3.bf16.msra.mxu0 %v2165_v55 }
  0x61   : > { %2021 = vmatprep.subr.bf16.mxu1 %v2167_v56  ;;  %1921 = vmatprep.subr.bf16.mxu0 %v2166_v57 }
  0x62   : > { %1278 = vmatprep.mubr.bf16.mxu0 %v2518_v31 }
  0x64   : > { %2022 = vmatpush3.bf16.msra.mxu1 %v2167_v56  ;;  %1922 = vmatpush3.bf16.msra.mxu0 %v2168_v8 }
  0x67   : > { %2024 = vmatmul.mubr.bf16.vlgmr.msra.gmra.mrb[0].mxu1 %v2524_v23  ;;  %1279 = vmatmul.mubr.bf16.vlgmr.msra.gmra.mrb[32].mxu0 %v1653_v49 }
  0x68   : > { %2027 = vmatprep.mubr.bf16.mxu1 %v1661_v48  ;;  %1286 = vmatprep.mubr.bf16.mxu0 %v1657_v13 }
  0x6f   : > { %2028 = vmatmul.mubr.bf16.gmra.mrb[4].mxu1 %v1737_v62  ;;  %1287 = vmatmul.mubr.bf16.gmra.mrb[36].mxu0 %v1656_v1 }
  0x70   : > { %1294 = vmatprep.mubr.bf16.mxu0 %v1660_v42 }
  0x77   : > { %1295 = vmatmul.mubr.bf16.gmra.mrb[40].mxu0 %v1659_v33 }
  0x78   : > { %1302 = vmatprep.mubr.bf16.mxu0 %v1736_v5 }
  0x7f   : > { %1303 = vmatmul.mubr.bf16.gmra.mrb[44].mxu0 %v1735_v52 }
  0xfa   : > { %v1819_v7 = vpop.f32.mrb[0].mxu0 }
  0xfb   : > { %v1820_v9 = vpop.f32.mrb[1].mxu0 }
  0xfc   : > { %v1821_v10 = vadd.f32 %v1820_v9, %v1819_v7  ;;  %v1822_v12 = vpop.f32.mrb[2].mxu0 }
  0xfd   : > { %v1823_v14 = vpop.f32.mrb[3].mxu0 }
  0xfe   : > { %v1824_v15 = vadd.f32 %v1823_v14, %v1822_v12 }
 0x102   : > { %v1825_v16 = vpop.f32.mrb[4].mxu0 }
 0x103   : > { %v1826_v44 = vpop.f32.mrb[5].mxu0 }
 0x104   : > { %v1827_v60 = vadd.f32 %v1826_v44, %v1825_v16  ;;  %v1828_v17 = vpop.f32.mrb[6].mxu0 }
 0x105   : > { %v1829_v18 = vpop.f32.mrb[7].mxu0 }
 0x106   : > { %v1830_v19 = vadd.f32 %v1829_v18, %v1828_v17 }
 0x10a   : > { %v1831_v20 = vpop.f32.mrb[8].mxu0 }
 0x10b   : > { %v1832_v21 = vpop.f32.mrb[9].mxu0 }
 0x10c   : > { %v1833_v22 = vadd.f32 %v1832_v21, %v1831_v20  ;;  %v1834_v26 = vpop.f32.mrb[10].mxu0 }
 0x10d   : > { %v1835_v4 = vpop.f32.mrb[11].mxu0 }
 0x10e   : > { %v1836_v34 = vadd.f32 %v1835_v4, %v1834_v26 }
 0x112   : > { %v1837_v36 = vpop.f32.mrb[12].mxu0 }
 0x113   : > { %v1838_v39 = vpop.f32.mrb[13].mxu0 }
 0x114   : > { %v1839_v40 = vadd.f32 %v1838_v39, %v1837_v36  ;;  %v1840_v27 = vpop.f32.mrb[14].mxu0 }
 0x115   : > { %v1841_v35 = vpop.f32.mrb[15].mxu0 }
 0x116   : > { %v1842_v41 = vadd.f32 %v1841_v35, %v1840_v27 }
 0x11a   : > { %v1871_v51 = vpop.f32.mrb[16].mxu0 }
 0x11b   : > { %v1872_v30 = vpop.f32.mrb[17].mxu0 }
 0x11c   : > { %v1873_v31 = vadd.f32 %v1872_v30, %v1871_v51  ;;  %v1874_v23 = vpop.f32.mrb[18].mxu0 }
 0x11d   : > { %v1875_v38 = vpop.f32.mrb[19].mxu0 }
 0x11e   : > { %v2034_v45 = vadd.f32 %v1873_v31, %v1821_v10  ;;  %v1876_v47 = vadd.f32 %v1875_v38, %v1874_v23 }
 0x120   : > { %v2040_v48 = vadd.f32 %v1876_v47, %v1824_v15 }
 0x122   : > { %v1877_v49 = vpop.f32.mrb[20].mxu0 }
 0x123   : > { %v1878_v50 = vpop.f32.mrb[21].mxu0 }
 0x124   : > { %v1879_v0 = vadd.f32 %v1878_v50, %v1877_v49  ;;  %v1880_v11 = vpop.f32.mrb[22].mxu0 }
 0x125   : > { %v1881_v13 = vpop.f32.mrb[23].mxu0 }
 0x126   : > { %v2031_v25 = vadd.f32 %v1879_v0, %v1827_v60  ;;  %v1882_v28 = vadd.f32 %v1881_v13, %v1880_v11 }
 0x128   : > { %v2037_v32 = vadd.f32 %v1882_v28, %v1830_v19 }
 0x12a   : > { %v1883_v1 = vpop.f32.mrb[24].mxu0 }
 0x12b   : > { %v1884_v24 = vpop.f32.mrb[25].mxu0 }
 0x12c   : > { %v1885_v43 = vadd.f32 %v1884_v24, %v1883_v1  ;;  %v1886_v46 = vpop.f32.mrb[26].mxu0 }
 0x12d   : > { %v1887_v52 = vpop.f32.mrb[27].mxu0 }
 0x12e   : > { %v2607_v53 = vadd.f32 %v1885_v43, %v1833_v22  ;;  %v1888_v42 = vadd.f32 %v1887_v52, %v1886_v46 }
 0x130   : > { %v2609_v6 = vadd.f32 %v1888_v42, %v1836_v34 }
 0x132   : > { %v1889_v37 = vpop.f32.mrb[28].mxu0 }
 0x133   : > { %v1890_v54 = vpop.f32.mrb[29].mxu0 }
 0x134   : > { %v1891_v33 = vadd.f32 %v1890_v54, %v1889_v37  ;;  %v1892_v55 = vpop.f32.mrb[30].mxu0 }
 0x135   : > { %v1893_v56 = vpop.f32.mrb[31].mxu0 }
 0x136   : > { %v2612_v57 = vadd.f32 %v1891_v33, %v1839_v40  ;;  %v1894_v58 = vadd.f32 %v1893_v56, %v1892_v55 }
 0x138   : > { %v2614_v8 = vadd.f32 %v1894_v58, %v1842_v41 }
 0x13a   : > { %v2025_v29 = vpop.f32.mrb[0].mxu1  ;;  %v1923_v59 = vpop.f32.mrb[32].mxu0 }
 0x13b   : > { %v1345_v61 = vpop.f32.mrb[1].mxu1  ;;  %v1924_v62 = vpop.f32.mrb[33].mxu0 }
 0x13c   : > { %v2026_v63 = vpop.f32.mrb[2].mxu1  ;;  %v1925_v2 = vadd.f32 %v1924_v62, %v1923_v59  ;;  %v1926_v3 = vpop.f32.mrb[34].mxu0 }
 0x13d   : > { %v1348_v5 = vpop.f32.mrb[3].mxu1  ;;  %v1927_v7 = vpop.f32.mrb[35].mxu0 }
 0x13e   : > { %v2035_v9 = vadd.f32 %v2034_v45, %v1925_v2  ;;  %v1928_v10 = vadd.f32 %v1927_v7, %v1926_v3 }
 0x140   : > { %v2036_v12 = vadd.f32 %v2035_v9, %v1345_v61  ;;  %v2041_v14 = vadd.f32 %v2040_v48, %v1928_v10 }
 0x142   : > { %v2029_v15 = vpop.f32.mrb[4].mxu1  ;;  %v2042_v16 = vadd.f32 %v2041_v14, %v1348_v5  ;;  %v1929_v44 = vpop.f32.mrb[36].mxu0  ;;  %v1437_v17 = vmul.f32 %v2036_v12, %v2036_v12 }
 0x143   : > { %v1361_v60 = vpop.f32.mrb[5].mxu1  ;;  %v1930_v18 = vpop.f32.mrb[37].mxu0 }
 0x144   : > { %v2030_v19 = vpop.f32.mrb[6].mxu1  ;;  %v1783_v20 = vpack.c.bf16 %v2042_v16, %v2036_v12  ;;  %v1424_v21 = vadd.f32 %v2042_v16, %v2036_v12  ;;  %v1438_v22 = vmul.f32 %v2042_v16, %v2042_v16  ;;  %v1931_v26 = vadd.f32 %v1930_v18, %v1929_v44  ;;  %v1932_v4 = vpop.f32.mrb[38].mxu0 }
 0x145   : > { %v1364_v34 = vpop.f32.mrb[7].mxu1  ;;  %v1933_v36 = vpop.f32.mrb[39].mxu0 }
 0x146   : > { %1784 = vst [vmem:[%s2619_s24] sm:$0xff] %v1783_v20   ;;  %v1445_v39 = vadd.f32 %v1438_v22, %v1437_v17  ;;  %v2032_v40 = vadd.f32 %v2031_v25, %v1931_v26  ;;  %v1934_v27 = vadd.f32 %v1933_v36, %v1932_v4 }
 0x148   : > { %v2033_v35 = vadd.f32 %v2032_v40, %v2025_v29  ;;  %v2038_v41 = vadd.f32 %v2037_v32, %v1934_v27 }
 0x14a   : > { %v1425_v51 = vadd.f32 %v2033_v35, %v1424_v21  ;;  %v1439_v30 = vmul.f32 %v2033_v35, %v2033_v35  ;;  %v2039_v31 = vadd.f32 %v2038_v41, %v2026_v63  ;;  %v1935_v23 = vpop.f32.mrb[40].mxu0 }
 0x14b   : > { %v1936_v38 = vpop.f32.mrb[41].mxu0 }
 0x14c   : > { %v1446_v45 = vadd.f32 %v1445_v39, %v1439_v30  ;;  %v1788_v47 = vpack.c.bf16 %v2039_v31, %v2033_v35  ;;  %v1426_v48 = vadd.f32 %v2039_v31, %v1425_v51  ;;  %v1440_v49 = vmul.f32 %v2039_v31, %v2039_v31  ;;  %v1938_v50 = vpop.f32.mrb[42].mxu0 }
 0x14d   : > { %v1937_v0 = vadd.f32 %v1936_v38, %v1935_v23  ;;  %v1939_v11 = vpop.f32.mrb[43].mxu0 }
 0x14e   : > { %1800 = vst [vmem:[%s2619_s24 + $0x8] sm:$0xff] %v1788_v47   ;;  %v1447_v13 = vadd.f32 %v1446_v45, %v1440_v49  ;;  %v1940_v28 = vadd.f32 %v1939_v11, %v1938_v50 }
 0x14f   : > { %v2047_v25 = vadd.f32 %v2607_v53, %v1937_v0 }
 0x150   : > { %v2053_v32 = vadd.f32 %v2609_v6, %v1940_v28 }
 0x151   : > { %v2048_v1 = vadd.f32 %v2047_v25, %v1361_v60 }
 0x152   : > { %v2054_v24 = vadd.f32 %v2053_v32, %v1364_v34  ;;  %v1941_v43 = vpop.f32.mrb[44].mxu0 }
 0x153   : > { %v1427_v46 = vadd.f32 %v2048_v1, %v1426_v48  ;;  %v1441_v52 = vmul.f32 %v2048_v1, %v2048_v1  ;;  %v1942_v42 = vpop.f32.mrb[45].mxu0 }
 0x154   : > { %v1793_v37 = vpack.c.bf16 %v2054_v24, %v2048_v1  ;;  %v1442_v54 = vmul.f32 %v2054_v24, %v2054_v24  ;;  %v1943_v33 = vadd.f32 %v1942_v42, %v1941_v43  ;;  %v1944_v55 = vpop.f32.mrb[46].mxu0 }
 0x155   : > { %v1448_v56 = vadd.f32 %v1447_v13, %v1441_v52  ;;  %v1428_v58 = vadd.f32 %v2054_v24, %v1427_v46  ;;  %v1945_v29 = vpop.f32.mrb[47].mxu0 }
 0x156   : > { %1801 = vst [vmem:[%s2619_s24 + $0x10] sm:$0xff] %v1793_v37   ;;  %v2044_v59 = vadd.f32 %v2612_v57, %v1943_v33  ;;  %v1946_v53 = vadd.f32 %v1945_v29, %v1944_v55 }
 0x157   : > { %v1449_v61 = vadd.f32 %v1448_v56, %v1442_v54 }
 0x158   : > { %v2045_v6 = vadd.f32 %v2044_v59, %v2029_v15  ;;  %v2050_v62 = vadd.f32 %v2614_v8, %v1946_v53 }
 0x15a   : > { %v1429_v63 = vadd.f32 %v2045_v6, %v1428_v58  ;;  %v1443_v2 = vmul.f32 %v2045_v6, %v2045_v6  ;;  %v2051_v3 = vadd.f32 %v2050_v62, %v2030_v19 }
 0x15c   : > { %v1450_v5 = vadd.f32 %v1449_v61, %v1443_v2  ;;  %v1798_v7 = vpack.c.bf16 %v2051_v3, %v2045_v6  ;;  %v1430_v9 = vadd.f32 %v2051_v3, %v1429_v63  ;;  %v1444_v10 = vmul.f32 %v2051_v3, %v2051_v3 }
 0x15e   : > { %1802 = vst [vmem:[%s2619_s24 + $0x18] sm:$0xff] %v1798_v7   ;;  %v1431_v12 = vrot.slane %v1430_v9, 4  ;;  %v1451_v14 = vadd.f32 %v1450_v5, %v1444_v10 }
 0x160   : > { %v1432_v16 = vadd.f32 %v1431_v12, %v1430_v9  ;;  %v1452_v44 = vrot.slane %v1451_v14, 4 }
 0x162   : > { %v1433_v60 = vrot.slane %v1432_v16, 2  ;;  %v1453_v57 = vadd.f32 %v1452_v44, %v1451_v14 }
 0x164   : > { %v1434_v17 = vadd.f32 %v1433_v60, %v1432_v16  ;;  %v1454_v18 = vrot.slane %v1453_v57, 2 }
 0x166   : > { %v1435_v15 = vrot.slane %v1434_v17, 1  ;;  %v1455_v20 = vadd.f32 %v1454_v18, %v1453_v57 }
 0x168   : > { %v1456_v8 = vrot.slane %v1455_v20, 1  ;;  %v1436_v19 = vadd.f32 %v1435_v15, %v1434_v17 }
 0x16a   : > { %v1457_v21 = vadd.f32 %v1456_v8, %v1455_v20 }
 0x16c   : > { %v1459_v22 = vsel %vm1458_vm0, %v1436_v19, %v1457_v21 }
 0x16d   : > { %1460 = vst [vmem:[%s182_s28] sm:$0x3] %v1459_v22 }
 0x16e PF: > { %s14_s12 = sadd.s32 1, %s2177_s12  }
 0x16f   : > { %p11_p5 = scmp.ge.s32.totalorder %s14_s12, 4  }
 0x171   :  { %13 = sbr.rel (!%p11_p5) target bundleno = 1 (0x1), region = 72 }

</bundles_post_ra>
